<compile_context>
chip_gen: v7x
topology: tpu7x:2x2x1
jax: 0.10.0
libtpu: 0.0.40
codegen_flags: <defaults>
</compile_context>

<pallas_src>
import functools

import jax
import jax.numpy as jnp
from jax import lax
from jax.experimental import pallas as pl
from jax.experimental.pallas import tpu as pltpu


def _round_up(n, m):
    return ((n + m - 1) // m) * m


def _sigmoid(x):
    # sigmoid(x) == 0.5 * tanh(0.5 * x) + 0.5 : one EUP op, no exp + divide.
    return 0.5 * jnp.tanh(0.5 * x) + 0.5


# ----------------------------------------------------------------------------
# Kernel: whole forward pass in one invocation (no grid).
#   x_ref   : (T*Bp, I)    time-major input, row index = t*Bp + b
#   w_ih_ref: (I, 4*Hp)    gate-padded W_ih^T       (dest gate order i,f,o,g)
#   b_ref   : (1, 4*Hp)    gate-padded (b_ih + b_hh)
#   w_hh_ref: (Hp, 4*Hp)   gate-padded W_hh^T
#   fc_w_ref: (Hp, Op)     padded fc weight^T
#   fc_b_ref: (1, Op)      padded fc bias
#   out_ref : (Bp, Op)     lane-dense output slab
#   xw_ref  : (T*Bp, 4*Hp) VMEM scratch for the hoisted input projection
# Each gate occupies its own 128-lane-aligned block of width Hp; padded lanes
# of weights/bias are zero so padded h/c lanes stay exactly 0.
# ----------------------------------------------------------------------------
def _lstm_fc_kernel(x_ref, w_ih_ref, b_ref, w_hh_ref, fc_w_ref, fc_b_ref,
                    out_ref, xw_ref, *, T, Bp, Hp, I):
    # Hoisted input projection for ALL time steps, written to VMEM scratch
    # (keeps it out of the vreg live set across the unrolled recurrence).
    if I == 1:
        # K=1 contraction: VPU broadcast multiply, no MXU push/drain.
        xw_ref[...] = x_ref[...] * w_ih_ref[...] + b_ref[...]
    else:
        xw_ref[...] = (jnp.dot(x_ref[...], w_ih_ref[...],
                               preferred_element_type=jnp.float32)
                       + b_ref[...])

    h = jnp.zeros((Bp, Hp), jnp.float32)   # 1 vreg
    c = jnp.zeros((Bp, Hp), jnp.float32)   # 1 vreg

    # Fully unrolled recurrence (T static, small).  All slices are static and
    # 8-sublane / 128-lane aligned; h/c stay in vregs across steps.
    for t in range(T):
        # w_hh is re-read from its Ref each step (short live range) and xw is
        # sliced from VMEM scratch -> live registers stay well under 64.
        gates = xw_ref[t * Bp:(t + 1) * Bp, :] + jnp.dot(
            h, w_hh_ref[...], preferred_element_type=jnp.float32)   # (Bp, 4Hp)

        # Gate layout [i, f, o | g]: one wide sigmoid + one tanh per step.
        sig = _sigmoid(gates[:, 0:3 * Hp])
        i_g = sig[:, 0 * Hp:1 * Hp]
        f_g = sig[:, 1 * Hp:2 * Hp]
        o_g = sig[:, 2 * Hp:3 * Hp]
        g_g = jnp.tanh(gates[:, 3 * Hp:4 * Hp])

        c = f_g * c + i_g * g_g
        h = o_g * jnp.tanh(c)

    # Final FC on the last hidden state; Op = 128 -> lane-dense unmasked store.
    out_ref[...] = (jnp.dot(h, fc_w_ref[...],
                            preferred_element_type=jnp.float32)
                    + fc_b_ref[...])


# ----------------------------------------------------------------------------
# One-time parameter layout (hoisted out of the per-call forward path).
# ----------------------------------------------------------------------------
def prepare_params(params):
    H = params["w_hh"].shape[1]          # w_hh: (4H, H)
    O = params["fc_w"].shape[0]          # fc_w: (O, H)
    Hp = _round_up(H, 128)               # lane-align each gate block
    Op = _round_up(O, 128)               # lane-dense output slab

    # Destination gate order [i, f, o, g]: sigmoid gates contiguous so the
    # kernel issues one wide sigmoid.  Source order is PyTorch's i, f, g, o.
    src_order = ("i", "f", "g", "o")
    dest_block = {"i": 0, "f": 1, "o": 2, "g": 3}

    def pad_gates(w_t):                  # (rows, 4H) -> (rows, 4*Hp)
        rows = w_t.shape[0]
        out = jnp.zeros((rows, 4 * Hp), jnp.float32)
        for src, name in enumerate(src_order):
            d = dest_block[name]
            out = out.at[:, d * Hp:d * Hp + H].set(w_t[:, src * H:(src + 1) * H])
        return out

    w_ih_p = pad_gates(params["w_ih"].T.astype(jnp.float32))           # (I, 4Hp)
    w_hh_p = (jnp.zeros((Hp, 4 * Hp), jnp.float32)
              .at[:H, :].set(pad_gates(params["w_hh"].T.astype(jnp.float32))))
    b_p = pad_gates((params["b_ih"] + params["b_hh"]).astype(jnp.float32)[None, :])
    fc_w_p = (jnp.zeros((Hp, Op), jnp.float32)
              .at[:H, :O].set(params["fc_w"].T.astype(jnp.float32)))   # (Hp, Op)
    fc_b_p = jnp.zeros((1, Op), jnp.float32).at[0, :O].set(params["fc_b"])

    return {"w_ih": w_ih_p, "w_hh": w_hh_p, "b": b_p,
            "fc_w": fc_w_p, "fc_b": fc_b_p}


def lstm_model_forward(x, prepped, out_size):
    """Equivalent of LSTMModel.forward.  x: (B, T, I) float32 (batch_first)."""
    B, T, I = x.shape
    w_ih_p, w_hh_p, b_p = prepped["w_ih"], prepped["w_hh"], prepped["b"]
    fc_w_p, fc_b_p = prepped["fc_w"], prepped["fc_b"]
    Hp = w_hh_p.shape[0]
    Op = fc_w_p.shape[1]
    Bp = _round_up(B, 8)                 # sublane-align the batch

    # Time-major, batch-padded input: row index = t*Bp + b.
    x_tm = (jnp.zeros((T, Bp, I), jnp.float32)
            .at[:, :B, :].set(jnp.swapaxes(x, 0, 1).astype(jnp.float32))
            .reshape(T * Bp, I))

    kernel = functools.partial(_lstm_fc_kernel, T=T, Bp=Bp, Hp=Hp, I=I)
    # No grid: single invocation; operands + scratch < 1 MiB of VMEM.
    out_pad = pl.pallas_call(
        kernel,
        out_shape=jax.ShapeDtypeStruct((Bp, Op), jnp.float32),
        scratch_shapes=[pltpu.VMEM((T * Bp, 4 * Hp), jnp.float32)],
    )(x_tm, w_ih_p, b_p, w_hh_p, fc_w_p, fc_b_p)

    return out_pad[:B, :out_size]


# ----------------------------------------------------------------------------
# Pure-JAX reference (mirrors torch nn.LSTM + nn.Linear semantics).
# ----------------------------------------------------------------------------
def lstm_model_reference(x, params):
    B, T, I = x.shape
    H = params["w_hh"].shape[1]
    w_ih, w_hh = params["w_ih"], params["w_hh"]
    b = params["b_ih"] + params["b_hh"]
    hi = lax.Precision.HIGHEST

    def step(carry, x_t):
        h, c = carry
        gates = (jnp.dot(x_t, w_ih.T, precision=hi)
                 + jnp.dot(h, w_hh.T, precision=hi) + b)
        i = jax.nn.sigmoid(gates[:, 0 * H:1 * H])
        f = jax.nn.sigmoid(gates[:, 1 * H:2 * H])
        g = jnp.tanh(gates[:, 2 * H:3 * H])
        o = jax.nn.sigmoid(gates[:, 3 * H:4 * H])
        c = f * c + i * g
        h = o * jnp.tanh(c)
        return (h, c), None

    h0 = jnp.zeros((B, H), jnp.float32)
    c0 = jnp.zeros((B, H), jnp.float32)
    (h_last, _), _ = lax.scan(step, (h0, c0), jnp.transpose(x, (1, 0, 2)))
    return jnp.dot(h_last, params["fc_w"].T, precision=hi) + params["fc_b"]


def init_params(key, input_size=1, hidden_size=50, output_size=1):
    """Deterministic init matching PyTorch's U(-1/sqrt(H), 1/sqrt(H)) shapes."""
    ks = jax.random.split(key, 6)
    k = 1.0 / jnp.sqrt(hidden_size)
    u = lambda kk, shp: jax.random.uniform(kk, shp, jnp.float32, -k, k)
    return {
        "w_ih": u(ks[0], (4 * hidden_size, input_size)),
        "w_hh": u(ks[1], (4 * hidden_size, hidden_size)),
        "b_ih": u(ks[2], (4 * hidden_size,)),
        "b_hh": u(ks[3], (4 * hidden_size,)),
        "fc_w": u(ks[4], (output_size, hidden_size)),
        "fc_b": u(ks[5], (output_size,)),
    }


if __name__ == "__main__":
    key = jax.random.PRNGKey(0)
    k_param, k_x = jax.random.split(key)

    B, T, I, H, O = 2, 8, 1, 50, 1
    params = init_params(k_param, input_size=I, hidden_size=H, output_size=O)
    x = jax.random.normal(k_x, (B, T, I), jnp.float32)

    prepped = prepare_params(params)     # one-time weight padding / layout
    fwd = jax.jit(lstm_model_forward, static_argnames=("out_size",))
    out = jax.block_until_ready(fwd(x, prepped, out_size=O))

    ref = lstm_model_reference(x, params)
    assert out.shape == (B, O)
    assert jnp.allclose(out, ref, atol=1e-4, rtol=1e-4), (out, ref)
    print("KERNEL_OK")
</pallas_src>

<mosaic_0001>
module attributes {stable_mosaic.version = 11 : i64} {
  func.func @_lstm_fc_kernel(%arg0: memref<64x1xf32, #tpu.memory_space<vmem>>, %arg1: memref<1x512xf32, #tpu.memory_space<vmem>>, %arg2: memref<1x512xf32, #tpu.memory_space<vmem>>, %arg3: memref<128x512xf32, #tpu.memory_space<vmem>>, %arg4: memref<128x128xf32, #tpu.memory_space<vmem>>, %arg5: memref<1x128xf32, #tpu.memory_space<vmem>>, %arg6: memref<8x128xf32, #tpu.memory_space<vmem>>, %arg7: memref<64x512xf32, #tpu.memory_space<vmem>>) attributes {dimension_semantics = [], scalar_prefetch = 0 : i64, scratch_operands = 1 : i64, tpu.core_type = #tpu.core_type<tc>} {
    %c0 = arith.constant 0 : index
    %c0_0 = arith.constant 0 : index
    %0 = vector.load %arg0[%c0, %c0_0] : memref<64x1xf32, #tpu.memory_space<vmem>>, vector<64x1xf32>
    %c0_1 = arith.constant 0 : index
    %c0_2 = arith.constant 0 : index
    %1 = vector.load %arg1[%c0_1, %c0_2] : memref<1x512xf32, #tpu.memory_space<vmem>>, vector<1x512xf32>
    %2 = vector.broadcast %0 : vector<64x1xf32> to vector<64x512xf32>
    %3 = vector.broadcast %1 : vector<1x512xf32> to vector<64x512xf32>
    %4 = arith.mulf %2, %3 : vector<64x512xf32>
    %c0_3 = arith.constant 0 : index
    %c0_4 = arith.constant 0 : index
    %5 = vector.load %arg2[%c0_3, %c0_4] : memref<1x512xf32, #tpu.memory_space<vmem>>, vector<1x512xf32>
    %6 = vector.broadcast %5 : vector<1x512xf32> to vector<64x512xf32>
    %7 = arith.addf %4, %6 : vector<64x512xf32>
    %c0_5 = arith.constant 0 : index
    %c0_6 = arith.constant 0 : index
    %8 = vector.load %arg7[%c0_5, %c0_6] : memref<64x512xf32, #tpu.memory_space<vmem>>, vector<64x512xf32>
    tpu.vector_store %arg7[%c0_5, %c0_6], %7 {strides = array<i32>} : memref<64x512xf32, #tpu.memory_space<vmem>>, vector<64x512xf32>,
    %cst = arith.constant 0.000000e+00 : f32
    %9 = vector.broadcast %cst : f32 to vector<8x128xf32>
    %cst_7 = arith.constant 0.000000e+00 : f32
    %10 = vector.broadcast %cst_7 : f32 to vector<8x128xf32>
    %c0_8 = arith.constant 0 : index
    %c0_9 = arith.constant 0 : index
    %11 = vector.load %arg7[%c0_8, %c0_9] : memref<64x512xf32, #tpu.memory_space<vmem>>, vector<8x512xf32>
    %c0_10 = arith.constant 0 : index
    %c0_11 = arith.constant 0 : index
    %12 = vector.load %arg3[%c0_10, %c0_11] : memref<128x512xf32, #tpu.memory_space<vmem>>, vector<128x512xf32>
    %cst_12 = arith.constant dense<0.000000e+00> : vector<8x512xf32>
    %13 = tpu.matmul %9, %12, %cst_12 {dimension_numbers = #tpu.dot_dimension_numbers<[1], [0], [0], [1], [0, 0, 1, 1], [], []>} : vector<8x128xf32>, vector<128x512xf32>, vector<8x512xf32> -> vector<8x512xf32>
    %14 = arith.addf %11, %13 : vector<8x512xf32>
    %15 = vector.extract_strided_slice %14 {offsets = [0, 0], sizes = [8, 384], strides = [1, 1]} : vector<8x512xf32> to vector<8x384xf32>
    %cst_13 = arith.constant 5.000000e-01 : f32
    %16 = vector.broadcast %cst_13 : f32 to vector<8x384xf32>
    %17 = arith.mulf %16, %15 : vector<8x384xf32>
    %18 = math.tanh %17 : vector<8x384xf32>
    %cst_14 = arith.constant 5.000000e-01 : f32
    %19 = vector.broadcast %cst_14 : f32 to vector<8x384xf32>
    %20 = arith.mulf %19, %18 : vector<8x384xf32>
    %cst_15 = arith.constant 5.000000e-01 : f32
    %21 = vector.broadcast %cst_15 : f32 to vector<8x384xf32>
    %22 = arith.addf %20, %21 : vector<8x384xf32>
    %23 = vector.extract_strided_slice %22 {offsets = [0, 0], sizes = [8, 128], strides = [1, 1]} : vector<8x384xf32> to vector<8x128xf32>
    %24 = vector.extract_strided_slice %22 {offsets = [0, 128], sizes = [8, 128], strides = [1, 1]} : vector<8x384xf32> to vector<8x128xf32>
    %25 = vector.extract_strided_slice %22 {offsets = [0, 256], sizes = [8, 128], strides = [1, 1]} : vector<8x384xf32> to vector<8x128xf32>
    %26 = vector.extract_strided_slice %14 {offsets = [0, 384], sizes = [8, 128], strides = [1, 1]} : vector<8x512xf32> to vector<8x128xf32>
    %27 = math.tanh %26 : vector<8x128xf32>
    %28 = arith.mulf %24, %10 : vector<8x128xf32>
    %29 = arith.mulf %23, %27 : vector<8x128xf32>
    %30 = arith.addf %28, %29 : vector<8x128xf32>
    %31 = math.tanh %30 : vector<8x128xf32>
    %32 = arith.mulf %25, %31 : vector<8x128xf32>
    %c8 = arith.constant 8 : index
    %c0_16 = arith.constant 0 : index
    %33 = vector.load %arg7[%c8, %c0_16] : memref<64x512xf32, #tpu.memory_space<vmem>>, vector<8x512xf32>
    %c0_17 = arith.constant 0 : index
    %c0_18 = arith.constant 0 : index
    %34 = vector.load %arg3[%c0_17, %c0_18] : memref<128x512xf32, #tpu.memory_space<vmem>>, vector<128x512xf32>
    %cst_19 = arith.constant dense<0.000000e+00> : vector<8x512xf32>
    %35 = tpu.matmul %32, %34, %cst_19 {dimension_numbers = #tpu.dot_dimension_numbers<[1], [0], [0], [1], [0, 0, 1, 1], [], []>} : vector<8x128xf32>, vector<128x512xf32>, vector<8x512xf32> -> vector<8x512xf32>
    %36 = arith.addf %33, %35 : vector<8x512xf32>
    %37 = vector.extract_strided_slice %36 {offsets = [0, 0], sizes = [8, 384], strides = [1, 1]} : vector<8x512xf32> to vector<8x384xf32>
    %cst_20 = arith.constant 5.000000e-01 : f32
    %38 = vector.broadcast %cst_20 : f32 to vector<8x384xf32>
    %39 = arith.mulf %38, %37 : vector<8x384xf32>
    %40 = math.tanh %39 : vector<8x384xf32>
    %cst_21 = arith.constant 5.000000e-01 : f32
    %41 = vector.broadcast %cst_21 : f32 to vector<8x384xf32>
    %42 = arith.mulf %41, %40 : vector<8x384xf32>
    %cst_22 = arith.constant 5.000000e-01 : f32
    %43 = vector.broadcast %cst_22 : f32 to vector<8x384xf32>
    %44 = arith.addf %42, %43 : vector<8x384xf32>
    %45 = vector.extract_strided_slice %44 {offsets = [0, 0], sizes = [8, 128], strides = [1, 1]} : vector<8x384xf32> to vector<8x128xf32>
    %46 = vector.extract_strided_slice %44 {offsets = [0, 128], sizes = [8, 128], strides = [1, 1]} : vector<8x384xf32> to vector<8x128xf32>
    %47 = vector.extract_strided_slice %44 {offsets = [0, 256], sizes = [8, 128], strides = [1, 1]} : vector<8x384xf32> to vector<8x128xf32>
    %48 = vector.extract_strided_slice %36 {offsets = [0, 384], sizes = [8, 128], strides = [1, 1]} : vector<8x512xf32> to vector<8x128xf32>
    %49 = math.tanh %48 : vector<8x128xf32>
    %50 = arith.mulf %46, %30 : vector<8x128xf32>
    %51 = arith.mulf %45, %49 : vector<8x128xf32>
    %52 = arith.addf %50, %51 : vector<8x128xf32>
    %53 = math.tanh %52 : vector<8x128xf32>
    %54 = arith.mulf %47, %53 : vector<8x128xf32>
    %c16 = arith.constant 16 : index
    %c0_23 = arith.constant 0 : index
    %55 = vector.load %arg7[%c16, %c0_23] : memref<64x512xf32, #tpu.memory_space<vmem>>, vector<8x512xf32>
    %c0_24 = arith.constant 0 : index
    %c0_25 = arith.constant 0 : index
    %56 = vector.load %arg3[%c0_24, %c0_25] : memref<128x512xf32, #tpu.memory_space<vmem>>, vector<128x512xf32>
    %cst_26 = arith.constant dense<0.000000e+00> : vector<8x512xf32>
    %57 = tpu.matmul %54, %56, %cst_26 {dimension_numbers = #tpu.dot_dimension_numbers<[1], [0], [0], [1], [0, 0, 1, 1], [], []>} : vector<8x128xf32>, vector<128x512xf32>, vector<8x512xf32> -> vector<8x512xf32>
    %58 = arith.addf %55, %57 : vector<8x512xf32>
    %59 = vector.extract_strided_slice %58 {offsets = [0, 0], sizes = [8, 384], strides = [1, 1]} : vector<8x512xf32> to vector<8x384xf32>
    %cst_27 = arith.constant 5.000000e-01 : f32
    %60 = vector.broadcast %cst_27 : f32 to vector<8x384xf32>
    %61 = arith.mulf %60, %59 : vector<8x384xf32>
    %62 = math.tanh %61 : vector<8x384xf32>
    %cst_28 = arith.constant 5.000000e-01 : f32
    %63 = vector.broadcast %cst_28 : f32 to vector<8x384xf32>
    %64 = arith.mulf %63, %62 : vector<8x384xf32>
    %cst_29 = arith.constant 5.000000e-01 : f32
    %65 = vector.broadcast %cst_29 : f32 to vector<8x384xf32>
    %66 = arith.addf %64, %65 : vector<8x384xf32>
    %67 = vector.extract_strided_slice %66 {offsets = [0, 0], sizes = [8, 128], strides = [1, 1]} : vector<8x384xf32> to vector<8x128xf32>
    %68 = vector.extract_strided_slice %66 {offsets = [0, 128], sizes = [8, 128], strides = [1, 1]} : vector<8x384xf32> to vector<8x128xf32>
    %69 = vector.extract_strided_slice %66 {offsets = [0, 256], sizes = [8, 128], strides = [1, 1]} : vector<8x384xf32> to vector<8x128xf32>
    %70 = vector.extract_strided_slice %58 {offsets = [0, 384], sizes = [8, 128], strides = [1, 1]} : vector<8x512xf32> to vector<8x128xf32>
    %71 = math.tanh %70 : vector<8x128xf32>
    %72 = arith.mulf %68, %52 : vector<8x128xf32>
    %73 = arith.mulf %67, %71 : vector<8x128xf32>
    %74 = arith.addf %72, %73 : vector<8x128xf32>
    %75 = math.tanh %74 : vector<8x128xf32>
    %76 = arith.mulf %69, %75 : vector<8x128xf32>
    %c24 = arith.constant 24 : index
    %c0_30 = arith.constant 0 : index
    %77 = vector.load %arg7[%c24, %c0_30] : memref<64x512xf32, #tpu.memory_space<vmem>>, vector<8x512xf32>
    %c0_31 = arith.constant 0 : index
    %c0_32 = arith.constant 0 : index
    %78 = vector.load %arg3[%c0_31, %c0_32] : memref<128x512xf32, #tpu.memory_space<vmem>>, vector<128x512xf32>
    %cst_33 = arith.constant dense<0.000000e+00> : vector<8x512xf32>
    %79 = tpu.matmul %76, %78, %cst_33 {dimension_numbers = #tpu.dot_dimension_numbers<[1], [0], [0], [1], [0, 0, 1, 1], [], []>} : vector<8x128xf32>, vector<128x512xf32>, vector<8x512xf32> -> vector<8x512xf32>
    %80 = arith.addf %77, %79 : vector<8x512xf32>
    %81 = vector.extract_strided_slice %80 {offsets = [0, 0], sizes = [8, 384], strides = [1, 1]} : vector<8x512xf32> to vector<8x384xf32>
    %cst_34 = arith.constant 5.000000e-01 : f32
    %82 = vector.broadcast %cst_34 : f32 to vector<8x384xf32>
    %83 = arith.mulf %82, %81 : vector<8x384xf32>
    %84 = math.tanh %83 : vector<8x384xf32>
    %cst_35 = arith.constant 5.000000e-01 : f32
    %85 = vector.broadcast %cst_35 : f32 to vector<8x384xf32>
    %86 = arith.mulf %85, %84 : vector<8x384xf32>
    %cst_36 = arith.constant 5.000000e-01 : f32
    %87 = vector.broadcast %cst_36 : f32 to vector<8x384xf32>
    %88 = arith.addf %86, %87 : vector<8x384xf32>
    %89 = vector.extract_strided_slice %88 {offsets = [0, 0], sizes = [8, 128], strides = [1, 1]} : vector<8x384xf32> to vector<8x128xf32>
    %90 = vector.extract_strided_slice %88 {offsets = [0, 128], sizes = [8, 128], strides = [1, 1]} : vector<8x384xf32> to vector<8x128xf32>
    %91 = vector.extract_strided_slice %88 {offsets = [0, 256], sizes = [8, 128], strides = [1, 1]} : vector<8x384xf32> to vector<8x128xf32>
    %92 = vector.extract_strided_slice %80 {offsets = [0, 384], sizes = [8, 128], strides = [1, 1]} : vector<8x512xf32> to vector<8x128xf32>
    %93 = math.tanh %92 : vector<8x128xf32>
    %94 = arith.mulf %90, %74 : vector<8x128xf32>
    %95 = arith.mulf %89, %93 : vector<8x128xf32>
    %96 = arith.addf %94, %95 : vector<8x128xf32>
    %97 = math.tanh %96 : vector<8x128xf32>
    %98 = arith.mulf %91, %97 : vector<8x128xf32>
    %c32 = arith.constant 32 : index
    %c0_37 = arith.constant 0 : index
    %99 = vector.load %arg7[%c32, %c0_37] : memref<64x512xf32, #tpu.memory_space<vmem>>, vector<8x512xf32>
    %c0_38 = arith.constant 0 : index
    %c0_39 = arith.constant 0 : index
    %100 = vector.load %arg3[%c0_38, %c0_39] : memref<128x512xf32, #tpu.memory_space<vmem>>, vector<128x512xf32>
    %cst_40 = arith.constant dense<0.000000e+00> : vector<8x512xf32>
    %101 = tpu.matmul %98, %100, %cst_40 {dimension_numbers = #tpu.dot_dimension_numbers<[1], [0], [0], [1], [0, 0, 1, 1], [], []>} : vector<8x128xf32>, vector<128x512xf32>, vector<8x512xf32> -> vector<8x512xf32>
    %102 = arith.addf %99, %101 : vector<8x512xf32>
    %103 = vector.extract_strided_slice %102 {offsets = [0, 0], sizes = [8, 384], strides = [1, 1]} : vector<8x512xf32> to vector<8x384xf32>
    %cst_41 = arith.constant 5.000000e-01 : f32
    %104 = vector.broadcast %cst_41 : f32 to vector<8x384xf32>
    %105 = arith.mulf %104, %103 : vector<8x384xf32>
    %106 = math.tanh %105 : vector<8x384xf32>
    %cst_42 = arith.constant 5.000000e-01 : f32
    %107 = vector.broadcast %cst_42 : f32 to vector<8x384xf32>
    %108 = arith.mulf %107, %106 : vector<8x384xf32>
    %cst_43 = arith.constant 5.000000e-01 : f32
    %109 = vector.broadcast %cst_43 : f32 to vector<8x384xf32>
    %110 = arith.addf %108, %109 : vector<8x384xf32>
    %111 = vector.extract_strided_slice %110 {offsets = [0, 0], sizes = [8, 128], strides = [1, 1]} : vector<8x384xf32> to vector<8x128xf32>
    %112 = vector.extract_strided_slice %110 {offsets = [0, 128], sizes = [8, 128], strides = [1, 1]} : vector<8x384xf32> to vector<8x128xf32>
    %113 = vector.extract_strided_slice %110 {offsets = [0, 256], sizes = [8, 128], strides = [1, 1]} : vector<8x384xf32> to vector<8x128xf32>
    %114 = vector.extract_strided_slice %102 {offsets = [0, 384], sizes = [8, 128], strides = [1, 1]} : vector<8x512xf32> to vector<8x128xf32>
    %115 = math.tanh %114 : vector<8x128xf32>
    %116 = arith.mulf %112, %96 : vector<8x128xf32>
    %117 = arith.mulf %111, %115 : vector<8x128xf32>
    %118 = arith.addf %116, %117 : vector<8x128xf32>
    %119 = math.tanh %118 : vector<8x128xf32>
    %120 = arith.mulf %113, %119 : vector<8x128xf32>
    %c40 = arith.constant 40 : index
    %c0_44 = arith.constant 0 : index
    %121 = vector.load %arg7[%c40, %c0_44] : memref<64x512xf32, #tpu.memory_space<vmem>>, vector<8x512xf32>
    %c0_45 = arith.constant 0 : index
    %c0_46 = arith.constant 0 : index
    %122 = vector.load %arg3[%c0_45, %c0_46] : memref<128x512xf32, #tpu.memory_space<vmem>>, vector<128x512xf32>
    %cst_47 = arith.constant dense<0.000000e+00> : vector<8x512xf32>
    %123 = tpu.matmul %120, %122, %cst_47 {dimension_numbers = #tpu.dot_dimension_numbers<[1], [0], [0], [1], [0, 0, 1, 1], [], []>} : vector<8x128xf32>, vector<128x512xf32>, vector<8x512xf32> -> vector<8x512xf32>
    %124 = arith.addf %121, %123 : vector<8x512xf32>
    %125 = vector.extract_strided_slice %124 {offsets = [0, 0], sizes = [8, 384], strides = [1, 1]} : vector<8x512xf32> to vector<8x384xf32>
    %cst_48 = arith.constant 5.000000e-01 : f32
    %126 = vector.broadcast %cst_48 : f32 to vector<8x384xf32>
    %127 = arith.mulf %126, %125 : vector<8x384xf32>
    %128 = math.tanh %127 : vector<8x384xf32>
    %cst_49 = arith.constant 5.000000e-01 : f32
    %129 = vector.broadcast %cst_49 : f32 to vector<8x384xf32>
    %130 = arith.mulf %129, %128 : vector<8x384xf32>
    %cst_50 = arith.constant 5.000000e-01 : f32
    %131 = vector.broadcast %cst_50 : f32 to vector<8x384xf32>
    %132 = arith.addf %130, %131 : vector<8x384xf32>
    %133 = vector.extract_strided_slice %132 {offsets = [0, 0], sizes = [8, 128], strides = [1, 1]} : vector<8x384xf32> to vector<8x128xf32>
    %134 = vector.extract_strided_slice %132 {offsets = [0, 128], sizes = [8, 128], strides = [1, 1]} : vector<8x384xf32> to vector<8x128xf32>
    %135 = vector.extract_strided_slice %132 {offsets = [0, 256], sizes = [8, 128], strides = [1, 1]} : vector<8x384xf32> to vector<8x128xf32>
    %136 = vector.extract_strided_slice %124 {offsets = [0, 384], sizes = [8, 128], strides = [1, 1]} : vector<8x512xf32> to vector<8x128xf32>
    %137 = math.tanh %136 : vector<8x128xf32>
    %138 = arith.mulf %134, %118 : vector<8x128xf32>
    %139 = arith.mulf %133, %137 : vector<8x128xf32>
    %140 = arith.addf %138, %139 : vector<8x128xf32>
    %141 = math.tanh %140 : vector<8x128xf32>
    %142 = arith.mulf %135, %141 : vector<8x128xf32>
    %c48 = arith.constant 48 : index
    %c0_51 = arith.constant 0 : index
    %143 = vector.load %arg7[%c48, %c0_51] : memref<64x512xf32, #tpu.memory_space<vmem>>, vector<8x512xf32>
    %c0_52 = arith.constant 0 : index
    %c0_53 = arith.constant 0 : index
    %144 = vector.load %arg3[%c0_52, %c0_53] : memref<128x512xf32, #tpu.memory_space<vmem>>, vector<128x512xf32>
    %cst_54 = arith.constant dense<0.000000e+00> : vector<8x512xf32>
    %145 = tpu.matmul %142, %144, %cst_54 {dimension_numbers = #tpu.dot_dimension_numbers<[1], [0], [0], [1], [0, 0, 1, 1], [], []>} : vector<8x128xf32>, vector<128x512xf32>, vector<8x512xf32> -> vector<8x512xf32>
    %146 = arith.addf %143, %145 : vector<8x512xf32>
    %147 = vector.extract_strided_slice %146 {offsets = [0, 0], sizes = [8, 384], strides = [1, 1]} : vector<8x512xf32> to vector<8x384xf32>
    %cst_55 = arith.constant 5.000000e-01 : f32
    %148 = vector.broadcast %cst_55 : f32 to vector<8x384xf32>
    %149 = arith.mulf %148, %147 : vector<8x384xf32>
    %150 = math.tanh %149 : vector<8x384xf32>
    %cst_56 = arith.constant 5.000000e-01 : f32
    %151 = vector.broadcast %cst_56 : f32 to vector<8x384xf32>
    %152 = arith.mulf %151, %150 : vector<8x384xf32>
    %cst_57 = arith.constant 5.000000e-01 : f32
    %153 = vector.broadcast %cst_57 : f32 to vector<8x384xf32>
    %154 = arith.addf %152, %153 : vector<8x384xf32>
    %155 = vector.extract_strided_slice %154 {offsets = [0, 0], sizes = [8, 128], strides = [1, 1]} : vector<8x384xf32> to vector<8x128xf32>
    %156 = vector.extract_strided_slice %154 {offsets = [0, 128], sizes = [8, 128], strides = [1, 1]} : vector<8x384xf32> to vector<8x128xf32>
    %157 = vector.extract_strided_slice %154 {offsets = [0, 256], sizes = [8, 128], strides = [1, 1]} : vector<8x384xf32> to vector<8x128xf32>
    %158 = vector.extract_strided_slice %146 {offsets = [0, 384], sizes = [8, 128], strides = [1, 1]} : vector<8x512xf32> to vector<8x128xf32>
    %159 = math.tanh %158 : vector<8x128xf32>
    %160 = arith.mulf %156, %140 : vector<8x128xf32>
    %161 = arith.mulf %155, %159 : vector<8x128xf32>
    %162 = arith.addf %160, %161 : vector<8x128xf32>
    %163 = math.tanh %162 : vector<8x128xf32>
    %164 = arith.mulf %157, %163 : vector<8x128xf32>
    %c56 = arith.constant 56 : index
    %c0_58 = arith.constant 0 : index
    %165 = vector.load %arg7[%c56, %c0_58] : memref<64x512xf32, #tpu.memory_space<vmem>>, vector<8x512xf32>
    %c0_59 = arith.constant 0 : index
    %c0_60 = arith.constant 0 : index
    %166 = vector.load %arg3[%c0_59, %c0_60] : memref<128x512xf32, #tpu.memory_space<vmem>>, vector<128x512xf32>
    %cst_61 = arith.constant dense<0.000000e+00> : vector<8x512xf32>
    %167 = tpu.matmul %164, %166, %cst_61 {dimension_numbers = #tpu.dot_dimension_numbers<[1], [0], [0], [1], [0, 0, 1, 1], [], []>} : vector<8x128xf32>, vector<128x512xf32>, vector<8x512xf32> -> vector<8x512xf32>
    %168 = arith.addf %165, %167 : vector<8x512xf32>
    %169 = vector.extract_strided_slice %168 {offsets = [0, 0], sizes = [8, 384], strides = [1, 1]} : vector<8x512xf32> to vector<8x384xf32>
    %cst_62 = arith.constant 5.000000e-01 : f32
    %170 = vector.broadcast %cst_62 : f32 to vector<8x384xf32>
    %171 = arith.mulf %170, %169 : vector<8x384xf32>
    %172 = math.tanh %171 : vector<8x384xf32>
    %cst_63 = arith.constant 5.000000e-01 : f32
    %173 = vector.broadcast %cst_63 : f32 to vector<8x384xf32>
    %174 = arith.mulf %173, %172 : vector<8x384xf32>
    %cst_64 = arith.constant 5.000000e-01 : f32
    %175 = vector.broadcast %cst_64 : f32 to vector<8x384xf32>
    %176 = arith.addf %174, %175 : vector<8x384xf32>
    %177 = vector.extract_strided_slice %176 {offsets = [0, 0], sizes = [8, 128], strides = [1, 1]} : vector<8x384xf32> to vector<8x128xf32>
    %178 = vector.extract_strided_slice %176 {offsets = [0, 128], sizes = [8, 128], strides = [1, 1]} : vector<8x384xf32> to vector<8x128xf32>
    %179 = vector.extract_strided_slice %176 {offsets = [0, 256], sizes = [8, 128], strides = [1, 1]} : vector<8x384xf32> to vector<8x128xf32>
    %180 = vector.extract_strided_slice %168 {offsets = [0, 384], sizes = [8, 128], strides = [1, 1]} : vector<8x512xf32> to vector<8x128xf32>
    %181 = math.tanh %180 : vector<8x128xf32>
    %182 = arith.mulf %178, %162 : vector<8x128xf32>
    %183 = arith.mulf %177, %181 : vector<8x128xf32>
    %184 = arith.addf %182, %183 : vector<8x128xf32>
    %185 = math.tanh %184 : vector<8x128xf32>
    %186 = arith.mulf %179, %185 : vector<8x128xf32>
    %c0_65 = arith.constant 0 : index
    %c0_66 = arith.constant 0 : index
    %187 = vector.load %arg4[%c0_65, %c0_66] : memref<128x128xf32, #tpu.memory_space<vmem>>, vector<128x128xf32>
    %cst_67 = arith.constant dense<0.000000e+00> : vector<8x128xf32>
    %188 = tpu.matmul %186, %187, %cst_67 {dimension_numbers = #tpu.dot_dimension_numbers<[1], [0], [0], [1], [0, 0, 1, 1], [], []>} : vector<8x128xf32>, vector<128x128xf32>, vector<8x128xf32> -> vector<8x128xf32>
    %c0_68 = arith.constant 0 : index
    %c0_69 = arith.constant 0 : index
    %189 = vector.load %arg5[%c0_68, %c0_69] : memref<1x128xf32, #tpu.memory_space<vmem>>, vector<1x128xf32>
    %190 = vector.broadcast %189 : vector<1x128xf32> to vector<8x128xf32>
    %191 = arith.addf %188, %190 : vector<8x128xf32>
    %c0_70 = arith.constant 0 : index
    %c0_71 = arith.constant 0 : index
    %192 = vector.load %arg6[%c0_70, %c0_71] : memref<8x128xf32, #tpu.memory_space<vmem>>, vector<8x128xf32>
    tpu.vector_store %arg6[%c0_70, %c0_71], %191 {strides = array<i32>} : memref<8x128xf32, #tpu.memory_space<vmem>>, vector<8x128xf32>,
    return
  }
}

</mosaic_0001>

<bundles_post_ra>
// kernel: lstm_model_forward.1
= control target key start
LH: loop header
LB: loop body
LE: loop exit
PB: predicated region body
PF: predicated region fallthrough
CT: control target
= control target key end

     0   :  { %11 = vsyncpa [#allocation4], 0  ;;  %s3028_s0 = inlined_call_operand.vmem [shape: f32[64,1], index: 0, kind: input, shape index: {}]   ;;  %s3029_s1 = inlined_call_operand.vmem [shape: f32[1,512], index: 1, kind: input, shape index: {}]   ;;  %s3030_s2 = inlined_call_operand.vmem [shape: f32[1,512], index: 2, kind: input, shape index: {}]   ;;  %s3031_s3 = inlined_call_operand.hbm [shape: f32[128,512], index: 3, kind: input, shape index: {}]   ;;  %s3032_s4 = inlined_call_operand.hbm [shape: f32[128,128], index: 4, kind: input, shape index: {}]   ;;  %s3033_s5 = inlined_call_operand.vmem [shape: f32[1,128], index: 5, kind: input, shape index: {}]   ;;  %s3034_s6 = inlined_call_operand.vmem [shape: f32[8,128], index: 6, kind: output, shape index: {}]  }
   0x1   :  { %12 = vsyncpa [#allocation6], 0  ;;  %s2476_s21 = smov [#allocation3]   ;;  %s2428_s25 = scalar_lea.hbm %s3031_s3, 8192 }
   0x2   :  { %s24_s22 = sshll.u32 %s2476_s21, 4  ;;  %p2429_p0 = scmp.ne.s32.totalorder %s3031_s3, %s2428_s25  ;;  %s25_s22 = int_to_ptr.vmem [resolvable:$true] %s24_s22 }
   0x3   :  { %p2432_p1 = scmp.lt.u32.totalorder %s2428_s25, %s3031_s3 }
   0x5   :  { %p2434_p2 = pnand %p2432_p1, %p2429_p0 }
   0x7   :  { %2437 = shalt.err (!%p2434_p2)
}
   0x8   :  { %s2438_s30 = scalar_lea.vmem %s25_s22, 8192  ;;  %p2443_p4 = scmp.lt.s32.totalorder %s25_s22, %s25_s22 }
   0x9   :  { %p2439_p3 = scmp.ne.s32.totalorder %s25_s22, %s2438_s30  ;;  %p2444_p5 = scmp.lt.s32.totalorder %s2438_s30, %s2438_s30 }
   0xb   :  { %p2445_p6 = por %p2444_p5, %p2443_p4 }
   0xd   :  { %p2446_p7 = pnand %p2445_p6, %p2439_p3 }
   0xf   :  { %2449 = shalt.err (!%p2446_p7)
}
  0x10   :  { %s2477_s7 = smov 512   ;;  %s2478_s8 = smov 32  }
  0x11   :  { %30 = dma.hbm_to_vmem [thread:$0]  %s3031_s3, 8192, %s25_s22, [#allocation4], %s2477_s7, %s2477_s7, %s2478_s8  }
  0x12   :  { %s2479_s11 = smov [#allocation5]   ;;  %s2450_s15 = scalar_lea.hbm %s3032_s4, 2048 }
  0x13   :  { %s36_s12 = sshll.u32 %s2479_s11, 4  ;;  %p2451_p8 = scmp.ne.s32.totalorder %s3032_s4, %s2450_s15  ;;  %s37_s12 = int_to_ptr.vmem [resolvable:$true] %s36_s12 }
  0x14   :  { %p2454_p9 = scmp.lt.u32.totalorder %s2450_s15, %s3032_s4 }
  0x16   :  { %p2456_p10 = pnand %p2454_p9, %p2451_p8 }
  0x18   :  { %2459 = shalt.err (!%p2456_p10)
}
  0x19   :  { %s2460_s20 = scalar_lea.vmem %s37_s12, 2048  ;;  %p2465_p12 = scmp.lt.s32.totalorder %s37_s12, %s37_s12 }
  0x1a   :  { %p2461_p11 = scmp.ne.s32.totalorder %s37_s12, %s2460_s20  ;;  %p2466_p13 = scmp.lt.s32.totalorder %s2460_s20, %s2460_s20 }
  0x1c   :  { %p2467_p0 = por %p2466_p13, %p2465_p12 }
  0x1e   :  { %p2468_p1 = pnand %p2467_p0, %p2461_p11 }
  0x20   :  { %2471 = shalt.err (!%p2468_p1)
}
  0x21   :  { %s2480_s3 = smov 128   ;;  %s2481_s21 = smov 8  }
  0x22   :  { %42 = dma.hbm_to_vmem [thread:$0]  %s3032_s4, 2048, %s37_s12, [#allocation6], %s2480_s3, %s2480_s3, %s2481_s21  }
  0x23   :  { %2472 = dma.done.wait [#allocation4], 8192  }
  0x24   :  { %2473 = vsyncadd [#allocation4], 4294959104 }
  0x25   :  { %2474 = dma.done.wait [#allocation6], 2048  }
  0x26   :  { %2475 = vsyncadd [#allocation6], 4294965248  ;;  %v2482_v0 = vmov 0.0   ;;  %v2483_v1 = vmov 0   ;;  %v244_v2 = vld [vmem:[#allocation3 + $0x8] sm:$0xff]  ;;  %v246_v4 = vld [vmem:[#allocation3 + $0x18] sm:$0xff] }
  0x27   :  { %371 = vmatprep.mubr.f32.mxu0 %v2482_v0  ;;  %442 = vmatprep.mubr.f32.mxu1 %v2482_v0  ;;  %v248_v3 = vld [vmem:[#allocation3 + $0x28] sm:$0xff]  ;;  %v250_v6 = vld [vmem:[#allocation3 + $0x38] sm:$0xff]  ;;  %v243_v7 = vld [vmem:[#allocation3] sm:$0xff]  ;;  %vm2485_vm0 = vmmov 0  }
  0x28   :  { %2346 = vset.pattern.permute.xlu0 %v2483_v1  ;;  %2347 = vset.pattern.permute.xlu1 %v2483_v1  ;;  %v2547_v5 = vpack.c.bf16 %v248_v3, %v244_v2  ;;  %v247_v8 = vld [vmem:[#allocation3 + $0x20] sm:$0xff]  ;;  %v2549_v9 = vpack.c.bf16 %v250_v6, %v246_v4  ;;  %v245_v11 = vld [vmem:[#allocation3 + $0x10] sm:$0xff]  ;;  %v252_v13 = vld [vmem:[#allocation3 + $0x48] sm:$0xff] }
  0x29   :  { %v2551_v10 = vpack.c.bf16 %v247_v8, %v243_v7  ;;  %v249_v12 = vld [vmem:[#allocation3 + $0x30] sm:$0xff]  ;;  %v256_v15 = vld [vmem:[#allocation3 + $0x68] sm:$0xff]  ;;  %v254_v16 = vld [vmem:[#allocation3 + $0x58] sm:$0xff] }
  0x2a   :  { %1801 = vmatprep.subr.bf16.mxu0 %v2547_v5  ;;  %v2554_v14 = vpack.c.bf16 %v249_v12, %v245_v11  ;;  %v258_v17 = vld [vmem:[#allocation3 + $0x78] sm:$0xff]  ;;  %1833 = vmatprep.subr.bf16.mxu1 %v2549_v9  ;;  %v2558_v18 = vpack.c.bf16 %v256_v15, %v252_v13  ;;  %v251_v20 = vld [vmem:[#allocation3 + $0x40] sm:$0xff]  ;;  %v253_v22 = vld [vmem:[#allocation3 + $0x50] sm:$0xff] }
  0x2b   :  { %1803 = vmatpush1.bf16.msra.mxu0 %v2551_v10  ;;  %v2560_v19 = vpack.c.bf16 %v258_v17, %v254_v16  ;;  %v255_v21 = vld [vmem:[#allocation3 + $0x60] sm:$0xff]  ;;  %v257_v24 = vld [vmem:[#allocation3 + $0x70] sm:$0xff]  ;;  %v260_v25 = vld [vmem:[#allocation3 + $0x88] sm:$0xff] }
  0x2c   :  { %1835 = vmatpush1.bf16.msra.mxu1 %v2554_v14  ;;  %v2563_v23 = vpack.c.bf16 %v255_v21, %v251_v20  ;;  %v264_v26 = vld [vmem:[#allocation3 + $0xa8] sm:$0xff]  ;;  %1805 = vmatprep.subr.bf16.mxu0 %v2558_v18  ;;  %v2567_v27 = vpack.c.bf16 %v257_v24, %v253_v22  ;;  %v262_v29 = vld [vmem:[#allocation3 + $0x98] sm:$0xff]  ;;  %v259_v31 = vld [vmem:[#allocation3 + $0x80] sm:$0xff] }
  0x2d   :  { %1837 = vmatprep.subr.bf16.mxu1 %v2560_v19  ;;  %v2569_v28 = vpack.c.bf16 %v264_v26, %v260_v25  ;;  %v266_v30 = vld [vmem:[#allocation3 + $0xb8] sm:$0xff]  ;;  %v263_v33 = vld [vmem:[#allocation3 + $0xa0] sm:$0xff]  ;;  %v261_v34 = vld [vmem:[#allocation3 + $0x90] sm:$0xff] }
  0x2e   :  { %v2571_v32 = vpack.c.bf16 %v266_v30, %v262_v29  ;;  %v265_v35 = vld [vmem:[#allocation3 + $0xb0] sm:$0xff]  ;;  %v2574_v36 = vpack.c.bf16 %v263_v33, %v259_v31  ;;  %v268_v37 = vld [vmem:[#allocation3 + $0xc8] sm:$0xff]  ;;  %v270_v39 = vld [vmem:[#allocation3 + $0xd8] sm:$0xff] }
  0x2f   :  { %1807 = vmatpush1.bf16.msra.mxu0 %v2563_v23  ;;  %v272_v38 = vld [vmem:[#allocation3 + $0xe8] sm:$0xff]  ;;  %v2578_v40 = vpack.c.bf16 %v265_v35, %v261_v34  ;;  %v274_v42 = vld [vmem:[#allocation3 + $0xf8] sm:$0xff]  ;;  %v267_v43 = vld [vmem:[#allocation3 + $0xc0] sm:$0xff] }
  0x30   :  { %1839 = vmatpush1.bf16.msra.mxu1 %v2567_v27  ;;  %1809 = vmatprep.subr.bf16.mxu0 %v2569_v28  ;;  %v2580_v41 = vpack.c.bf16 %v272_v38, %v268_v37  ;;  %v271_v44 = vld [vmem:[#allocation3 + $0xe0] sm:$0xff]  ;;  %v2583_v45 = vpack.c.bf16 %v274_v42, %v270_v39  ;;  %v269_v46 = vld [vmem:[#allocation3 + $0xd0] sm:$0xff]  ;;  %v276_v48 = vld [vmem:[#allocation3 + $0x108] sm:$0xff] }
  0x31   :  { %1841 = vmatprep.subr.bf16.mxu1 %v2571_v32  ;;  %v273_v47 = vld [vmem:[#allocation3 + $0xf0] sm:$0xff]  ;;  %v280_v49 = vld [vmem:[#allocation3 + $0x128] sm:$0xff]  ;;  %v278_v50 = vld [vmem:[#allocation3 + $0x118] sm:$0xff]  ;;  %v2586_v52 = vpack.c.bf16 %v271_v44, %v267_v43 }
  0x32   :  { %v282_v51 = vld [vmem:[#allocation3 + $0x138] sm:$0xff]  ;;  %v2590_v53 = vpack.c.bf16 %v273_v47, %v269_v46  ;;  %v2592_v54 = vpack.c.bf16 %v280_v49, %v276_v48  ;;  %v275_v55 = vld [vmem:[#allocation3 + $0x100] sm:$0xff]  ;;  %v277_v57 = vld [vmem:[#allocation3 + $0x110] sm:$0xff] }
  0x33   :  { %1811 = vmatpush1.bf16.msra.mxu0 %v2574_v36  ;;  %v279_v56 = vld [vmem:[#allocation3 + $0x120] sm:$0xff]  ;;  %v2595_v58 = vpack.c.bf16 %v282_v51, %v278_v50  ;;  %v281_v59 = vld [vmem:[#allocation3 + $0x130] sm:$0xff]  ;;  %v284_v60 = vld [vmem:[#allocation3 + $0x148] sm:$0xff] }
  0x34   :  { %1843 = vmatpush1.bf16.msra.mxu1 %v2578_v40  ;;  %1813 = vmatprep.subr.bf16.mxu0 %v2580_v41  ;;  %v288_v61 = vld [vmem:[#allocation3 + $0x168] sm:$0xff]  ;;  %v286_v62 = vld [vmem:[#allocation3 + $0x158] sm:$0xff]  ;;  %v2598_v1 = vpack.c.bf16 %v279_v56, %v275_v55  ;;  %v2602_v2 = vpack.c.bf16 %v281_v59, %v277_v57  ;;  %v283_v4 = vld [vmem:[#allocation3 + $0x140] sm:$0xff]  ;;  %v101_v56 = vlaneseq }
  0x35   :  { %1845 = vmatprep.subr.bf16.mxu1 %v2583_v45  ;;  %v290_v63 = vld [vmem:[#allocation3 + $0x178] sm:$0xff]  ;;  %v2604_v3 = vpack.c.bf16 %v288_v61, %v284_v60  ;;  %v287_v6 = vld [vmem:[#allocation3 + $0x160] sm:$0xff]  ;;  %v285_v7 = vld [vmem:[#allocation3 + $0x150] sm:$0xff] }
  0x36   :  { %v2607_v8 = vpack.c.bf16 %v290_v63, %v286_v62  ;;  %v289_v11 = vld [vmem:[#allocation3 + $0x170] sm:$0xff]  ;;  %v292_v12 = vld [vmem:[#allocation3 + $0x188] sm:$0xff]  ;;  %v294_v15 = vld [vmem:[#allocation3 + $0x198] sm:$0xff]  ;;  %v2610_v17 = vpack.c.bf16 %v287_v6, %v283_v4  ;;  %v102_v57 = vshrl.u32 %v101_v56, 7 }
  0x37   :  { %1815 = vmatpush1.bf16.msra.mxu0 %v2586_v52  ;;  %v296_v13 = vld [vmem:[#allocation3 + $0x1a8] sm:$0xff]  ;;  %v298_v16 = vld [vmem:[#allocation3 + $0x1b8] sm:$0xff]  ;;  %v291_v20 = vld [vmem:[#allocation3 + $0x180] sm:$0xff]  ;;  %v2614_v21 = vpack.c.bf16 %v289_v11, %v285_v7 }
  0x38   :  { %1847 = vmatpush1.bf16.msra.mxu1 %v2590_v53  ;;  %1817 = vmatprep.subr.bf16.mxu0 %v2592_v54  ;;  %v2616_v22 = vpack.c.bf16 %v296_v13, %v292_v12  ;;  %v295_v24 = vld [vmem:[#allocation3 + $0x1a0] sm:$0xff]  ;;  %v293_v25 = vld [vmem:[#allocation3 + $0x190] sm:$0xff]  ;;  %v2622_v29 = vpack.c.bf16 %v298_v16, %v294_v15  ;;  %v300_v31 = vld [vmem:[#allocation3 + $0x1c8] sm:$0xff]  ;;  %v103_v59 = vsub.s32 0, %v102_v57  ;;  %v107_v61 = vsub.s32 1, %v102_v57 }
  0x39   :  { %1849 = vmatprep.subr.bf16.mxu1 %v2595_v58  ;;  %v51_v26 = vld [vmem:[%s3028_s0] sm:$0xff]  ;;  %v297_v30 = vld [vmem:[#allocation3 + $0x1b0] sm:$0xff]  ;;  %v304_v33 = vld [vmem:[#allocation3 + $0x1e8] sm:$0xff]  ;;  %v2628_v38 = vpack.c.bf16 %v295_v24, %v291_v20  ;;  %v115_v63 = vsub.s32 3, %v102_v57  ;;  %v111_v15 = vsub.s32 2, %v102_v57 }
  0x3a   :  { %62 = vperm.xlu0 %2346, %v51_v26   ;;  %v302_v34 = vld [vmem:[#allocation3 + $0x1d8] sm:$0xff]  ;;  %v52_v37 = vld [vmem:[%s3028_s0 + $0x8] sm:$0xff]  ;;  %v2632_v39 = vpack.c.bf16 %v297_v30, %v293_v25  ;;  %v2634_v42 = vpack.c.bf16 %v304_v33, %v300_v31  ;;  %v299_v43 = vld [vmem:[#allocation3 + $0x1c0] sm:$0xff] }
  0x3b   :  { %1819 = vmatpush1.bf16.msra.mxu0 %v2598_v1  ;;  %v306_v35 = vld [vmem:[#allocation3 + $0x1f8] sm:$0xff]  ;;  %v303_v44 = vld [vmem:[#allocation3 + $0x1e0] sm:$0xff]  ;;  %v301_v47 = vld [vmem:[#allocation3 + $0x1d0] sm:$0xff] }
  0x3c   :  { %1851 = vmatpush1.bf16.msra.mxu1 %v2602_v2  ;;  %1821 = vmatprep.subr.bf16.mxu0 %v2604_v3  ;;  %v2637_v46 = vpack.c.bf16 %v306_v35, %v302_v34  ;;  %v305_v48 = vld [vmem:[#allocation3 + $0x1f0] sm:$0xff]  ;;  %v55_v49 = vld [vmem:[%s3028_s0 + $0x20] sm:$0xff]  ;;  %v2643_v50 = vpack.c.bf16 %v303_v44, %v299_v43 }
  0x3d   :  { %1853 = vmatprep.subr.bf16.mxu1 %v2607_v8  ;;  %v2647_v51 = vpack.c.bf16 %v305_v48, %v301_v47  ;;  %v57_v55 = vld [vmem:[%s3028_s0 + $0x30] sm:$0xff]  ;;  %v59_v60 = vld [vmem:[%s3029_s1] sm:$0xf] }
  0x3e   :  { %67 = vperm.xlu0 %2346, %v52_v37   ;;  %v2696_v62 = vrot.slane %v59_v60, %v103_v59  ;;  %v2698_v4 = vrot.slane %v59_v60, %v107_v61  ;;  %v153_v6 = vld [vmem:[%s3030_s2] sm:$0xf]  ;;  %v2703_v11 = vrot.slane %v59_v60, %v115_v63  ;;  %v2715_v30 = vrot.slane %v59_v60, %v111_v15 }
  0x3f   :  { %1823 = vmatpush1.bf16.msra.mxu0 %v2610_v17  ;;  %v2706_v13 = vrot.slane %v153_v6, %v103_v59  ;;  %v2709_v20 = vrot.slane %v153_v6, %v107_v61  ;;  %v2713_v26 = vrot.slane %v153_v6, %v115_v63  ;;  %v2720_v47 = vrot.slane %v153_v6, %v111_v15 }
  0x40   :  { %1855 = vmatpush1.bf16.msra.mxu1 %v2614_v21  ;;  %1825 = vmatprep.subr.bf16.mxu0 %v2616_v22 }
  0x41   :  { %1857 = vmatprep.subr.bf16.mxu1 %v2622_v29 }
  0x42   :  { %82 = vperm.xlu0 %2346, %v55_v49  }
  0x43   :  { %1827 = vmatpush1.bf16.msra.mxu0 %v2628_v38 }
  0x44   :  { %1859 = vmatpush1.bf16.msra.mxu1 %v2632_v39  ;;  %1829 = vmatprep.subr.bf16.mxu0 %v2634_v42 }
  0x45   :  { %1861 = vmatprep.subr.bf16.mxu1 %v2637_v46 }
  0x46   :  { %92 = vperm.xlu0 %2346, %v57_v55  }
  0x47   :  { %1831 = vmatpush1.bf16.msra.mxu0 %v2643_v50 }
  0x48   :  { %1863 = vmatpush1.bf16.msra.mxu1 %v2647_v51  ;;  %1865 = vmatprep.subr.bf16.mxu0 %v2547_v5 }
  0x49   :  { %1897 = vmatprep.subr.bf16.mxu1 %v2549_v9 }
  0x4a   :  { %372 = vmatmul.mubr.f32.vlgmr.msra.gmra.mrb[0].mxu0 %v2482_v0 }
  0x4b   :  { %443 = vmatmul.mubr.f32.vlgmr.msra.gmra.mrb[0].mxu1 %v2482_v0  ;;  %1867 = vmatpush1.bf16.msra.mxu0 %v2551_v10 }
  0x4c   :  { %1899 = vmatpush1.bf16.msra.mxu1 %v2554_v14  ;;  %1869 = vmatprep.subr.bf16.mxu0 %v2558_v18 }
  0x4d   :  { %1901 = vmatprep.subr.bf16.mxu1 %v2560_v19  ;;  %539 = vmatprep.mubr.f32.mxu0 %v2482_v0 }
  0x4e   :  { %610 = vmatprep.mubr.f32.mxu1 %v2482_v0 }
  0x4f   :  { %1871 = vmatpush1.bf16.msra.mxu0 %v2563_v23 }
  0x50   :  { %1903 = vmatpush1.bf16.msra.mxu1 %v2567_v27  ;;  %1873 = vmatprep.subr.bf16.mxu0 %v2569_v28 }
  0x51   :  { %1905 = vmatprep.subr.bf16.mxu1 %v2571_v32 }
  0x53   :  { %1875 = vmatpush1.bf16.msra.mxu0 %v2574_v36 }
  0x54   :  { %1907 = vmatpush1.bf16.msra.mxu1 %v2578_v40  ;;  %1877 = vmatprep.subr.bf16.mxu0 %v2580_v41 }
  0x55   :  { %1909 = vmatprep.subr.bf16.mxu1 %v2583_v45 }
  0x57   :  { %1879 = vmatpush1.bf16.msra.mxu0 %v2586_v52 }
  0x58   :  { %1911 = vmatpush1.bf16.msra.mxu1 %v2590_v53  ;;  %1881 = vmatprep.subr.bf16.mxu0 %v2592_v54 }
  0x59   :  { %1913 = vmatprep.subr.bf16.mxu1 %v2595_v58 }
  0x5b   :  { %1883 = vmatpush1.bf16.msra.mxu0 %v2598_v1 }
  0x5c   :  { %1915 = vmatpush1.bf16.msra.mxu1 %v2602_v2  ;;  %1885 = vmatprep.subr.bf16.mxu0 %v2604_v3 }
  0x5d   :  { %1917 = vmatprep.subr.bf16.mxu1 %v2607_v8 }
  0x5f   :  { %1887 = vmatpush1.bf16.msra.mxu0 %v2610_v17 }
  0x60   :  { %1919 = vmatpush1.bf16.msra.mxu1 %v2614_v21  ;;  %1889 = vmatprep.subr.bf16.mxu0 %v2616_v22 }
  0x61   :  { %1921 = vmatprep.subr.bf16.mxu1 %v2622_v29 }
  0x63   :  { %1891 = vmatpush1.bf16.msra.mxu0 %v2628_v38 }
  0x64   :  { %1923 = vmatpush1.bf16.msra.mxu1 %v2632_v39  ;;  %1893 = vmatprep.subr.bf16.mxu0 %v2634_v42 }
  0x65   :  { %1925 = vmatprep.subr.bf16.mxu1 %v2637_v46 }
  0x67   :  { %1895 = vmatpush1.bf16.msra.mxu0 %v2643_v50 }
  0x68   :  { %1927 = vmatpush1.bf16.msra.mxu1 %v2647_v51  ;;  %1929 = vmatprep.subr.bf16.mxu0 %v2547_v5 }
  0x69   :  { %1961 = vmatprep.subr.bf16.mxu1 %v2549_v9 }
  0xb9   :  { %v63_v7 = vpop.permute.xlu0 %62 }
  0xba   :  { %v121_v12 = vmul.f32 %v2696_v62, %v63_v7  ;;  %v122_v16 = vmul.f32 %v2698_v4, %v63_v7  ;;  %v124_v25 = vmul.f32 %v2703_v11, %v63_v7  ;;  %v123_v44 = vmul.f32 %v2715_v30, %v63_v7 }
  0xbc   :  { %v175_v24 = vadd.f32 %v2706_v13, %v121_v12  ;;  %v176_v31 = vadd.f32 %v2709_v20, %v122_v16  ;;  %v178_v43 = vadd.f32 %v2713_v26, %v124_v25  ;;  %v177_v59 = vadd.f32 %v2720_v47, %v123_v44 }
 0x11d   :  { %v373_v33 = vpop.f32.mrb[0].mxu0 }
 0x11e   :  { %v449_v34 = vadd.f32 %v373_v33, %v175_v24  ;;  %v444_v35 = vpop.f32.mrb[0].mxu1  ;;  %v375_v37 = vpop.f32.mrb[1].mxu0 }
 0x11f   :  { %v450_v48 = vadd.f32 %v375_v37, %v176_v31  ;;  %v446_v49 = vpop.f32.mrb[1].mxu1  ;;  %v451_v60 = vadd.f32 %v444_v35, %v177_v59 }
 0x120   :  { %v453_v55 = vmul.f32 0.5, %v449_v34  ;;  %v452_v57 = vadd.f32 %v446_v49, %v178_v43  ;;  %v54_v49 = vld [vmem:[%s3028_s0 + $0x18] sm:$0xff] }
 0x121   :  { %v454_v56 = vmul.f32 0.5, %v450_v48  ;;  %v455_v61 = vmul.f32 0.5, %v451_v60  ;;  %v53_v48 = vld [vmem:[%s3028_s0 + $0x10] sm:$0xff] }
 0x122   :  { %2348 = vtanh.f32 %v453_v55  ;;  %72 = vperm.xlu1 %2347, %v53_v48   ;;  %v56_v55 = vld [vmem:[%s3028_s0 + $0x28] sm:$0xff] }
 0x123   :  { %2350 = vtanh.f32 %v454_v56  ;;  %v58_v56 = vld [vmem:[%s3028_s0 + $0x38] sm:$0xff] }
 0x124   :  { %2352 = vtanh.f32 %v452_v57  ;;  %v68_v57 = vpop.permute.xlu0 %67 }
 0x125   :  { %2354 = vtanh.f32 %v455_v61  ;;  %v125_v59 = vmul.f32 %v2696_v62, %v68_v57  ;;  %v126_v60 = vmul.f32 %v2698_v4, %v68_v57 }
 0x126   :  { %77 = vperm.xlu1 %2347, %v54_v49  }
 0x127   :  { %v179_v61 = vadd.f32 %v2706_v13, %v125_v59 }
 0x12a   :  { %87 = vperm.xlu1 %2347, %v56_v55  }
 0x12c   :  { %v2349_v63 = vpop.eup %2348 }
 0x12d   :  { %v459_v12 = vmul.f32 0.5, %v2349_v63  ;;  %v2351_v16 = vpop.eup %2350  ;;  %v128_v63 = vmul.f32 %v2703_v11, %v68_v57 }
 0x12e   :  { %v460_v7 = vmul.f32 0.5, %v2351_v16  ;;  %v2353_v6 = vpop.eup %2352  ;;  %97 = vperm.xlu1 %2347, %v58_v56  }
 0x12f   :  { %v462_v24 = vadd.f32 0.5, %v459_v12  ;;  %v2355_v34 = vpop.eup %2354 }
 0x130   :  { %v463_v15 = vadd.f32 0.5, %v460_v7  ;;  %v461_v37 = vmul.f32 0.5, %v2355_v34  ;;  %v182_v34 = vadd.f32 %v2713_v26, %v128_v63 }
 0x131   :  { %v467_v25 = vmul.f32 %v2353_v6, %v462_v24  ;;  %v180_v24 = vadd.f32 %v2709_v20, %v126_v60 }
 0x132   :  { %v466_v31 = vmul.f32 0.0, %v463_v15  ;;  %v464_v43 = vadd.f32 0.5, %v461_v37  ;;  %v127_v37 = vmul.f32 %v2715_v30, %v68_v57 }
 0x134   :  { %v2723_v33 = vadd.f32 %v467_v25, %v466_v31 }
 0x136   :  { %2356 = vtanh.f32 %v2723_v33 }
 0x140   :  { %v2357_v44 = vpop.eup %2356 }
 0x141   :  { %v470_v35 = vmul.f32 %v2357_v44, %v464_v43 }
 0x143   :  { %540 = vmatmul.mubr.f32.vlgmr.msra.gmra.mrb[2].mxu0 %v470_v35  ;;  %611 = vmatmul.mubr.f32.vlgmr.msra.gmra.mrb[2].mxu1 %v470_v35  ;;  %v181_v35 = vadd.f32 %v2720_v47, %v127_v37 }
 0x144   :  { %1931 = vmatpush1.bf16.msra.mxu0 %v2551_v10  ;;  %1963 = vmatpush1.bf16.msra.mxu1 %v2554_v14 }
 0x145   :  { %1933 = vmatprep.subr.bf16.mxu0 %v2558_v18  ;;  %1965 = vmatprep.subr.bf16.mxu1 %v2560_v19 }
 0x146   :  { %707 = vmatprep.mubr.f32.mxu0 %v2482_v0  ;;  %778 = vmatprep.mubr.f32.mxu1 %v2482_v0 }
 0x148   :  { %1935 = vmatpush1.bf16.msra.mxu0 %v2563_v23  ;;  %1967 = vmatpush1.bf16.msra.mxu1 %v2567_v27 }
 0x149   :  { %1937 = vmatprep.subr.bf16.mxu0 %v2569_v28  ;;  %1969 = vmatprep.subr.bf16.mxu1 %v2571_v32 }
 0x14c   :  { %1939 = vmatpush1.bf16.msra.mxu0 %v2574_v36  ;;  %1971 = vmatpush1.bf16.msra.mxu1 %v2578_v40 }
 0x14d   :  { %1941 = vmatprep.subr.bf16.mxu0 %v2580_v41  ;;  %1973 = vmatprep.subr.bf16.mxu1 %v2583_v45 }
 0x150   :  { %1943 = vmatpush1.bf16.msra.mxu0 %v2586_v52  ;;  %1975 = vmatpush1.bf16.msra.mxu1 %v2590_v53 }
 0x151   :  { %1945 = vmatprep.subr.bf16.mxu0 %v2592_v54  ;;  %1977 = vmatprep.subr.bf16.mxu1 %v2595_v58 }
 0x154   :  { %1947 = vmatpush1.bf16.msra.mxu0 %v2598_v1  ;;  %1979 = vmatpush1.bf16.msra.mxu1 %v2602_v2 }
 0x155   :  { %1949 = vmatprep.subr.bf16.mxu0 %v2604_v3  ;;  %1981 = vmatprep.subr.bf16.mxu1 %v2607_v8 }
 0x158   :  { %1951 = vmatpush1.bf16.msra.mxu0 %v2610_v17  ;;  %1983 = vmatpush1.bf16.msra.mxu1 %v2614_v21 }
 0x159   :  { %1953 = vmatprep.subr.bf16.mxu0 %v2616_v22  ;;  %1985 = vmatprep.subr.bf16.mxu1 %v2622_v29 }
 0x15c   :  { %1955 = vmatpush1.bf16.msra.mxu0 %v2628_v38  ;;  %1987 = vmatpush1.bf16.msra.mxu1 %v2632_v39 }
 0x15d   :  { %1957 = vmatprep.subr.bf16.mxu0 %v2634_v42  ;;  %1989 = vmatprep.subr.bf16.mxu1 %v2637_v46 }
 0x160   :  { %1959 = vmatpush1.bf16.msra.mxu0 %v2643_v50  ;;  %1991 = vmatpush1.bf16.msra.mxu1 %v2647_v51 }
 0x161   :  { %1993 = vmatprep.subr.bf16.mxu0 %v2547_v5  ;;  %2025 = vmatprep.subr.bf16.mxu1 %v2549_v9 }
 0x216   :  { %v541_v12 = vpop.f32.mrb[2].mxu0  ;;  %v612_v16 = vpop.f32.mrb[2].mxu1 }
 0x217   :  { %v617_v7 = vadd.f32 %v541_v12, %v179_v61  ;;  %v543_v6 = vpop.f32.mrb[3].mxu0  ;;  %v614_v15 = vpop.f32.mrb[3].mxu1  ;;  %v619_v48 = vadd.f32 %v612_v16, %v181_v35 }
 0x218   :  { %v618_v25 = vadd.f32 %v543_v6, %v180_v24  ;;  %v620_v44 = vadd.f32 %v614_v15, %v182_v34 }
 0x219   :  { %v621_v31 = vmul.f32 0.5, %v617_v7  ;;  %v623_v49 = vmul.f32 0.5, %v619_v48 }
 0x21a   :  { %v622_v43 = vmul.f32 0.5, %v618_v25 }
 0x21b   :  { %2358 = vtanh.f32 %v621_v31 }
 0x21c   :  { %2360 = vtanh.f32 %v622_v43 }
 0x21d   :  { %2362 = vtanh.f32 %v620_v44 }
 0x21e   :  { %2364 = vtanh.f32 %v623_v49 }
 0x225   :  { %v2359_v55 = vpop.eup %2358 }
 0x226   :  { %v627_v56 = vmul.f32 0.5, %v2359_v55  ;;  %v2361_v59 = vpop.eup %2360 }
 0x227   :  { %v628_v61 = vmul.f32 0.5, %v2361_v59  ;;  %v2363_v12 = vpop.eup %2362 }
 0x228   :  { %v630_v60 = vadd.f32 0.5, %v627_v56  ;;  %v2365_v6 = vpop.eup %2364 }
 0x229   :  { %v631_v24 = vadd.f32 0.5, %v628_v61  ;;  %v629_v15 = vmul.f32 0.5, %v2365_v6 }
 0x22a   :  { %v635_v63 = vmul.f32 %v2363_v12, %v630_v60 }
 0x22b   :  { %v634_v57 = vmul.f32 %v631_v24, %v2723_v33  ;;  %v632_v25 = vadd.f32 0.5, %v629_v15  ;;  %v73_v33 = vpop.permute.xlu1 %72 }
 0x22c   :  { %v129_v34 = vmul.f32 %v2696_v62, %v73_v33  ;;  %v130_v37 = vmul.f32 %v2698_v4, %v73_v33  ;;  %v132_v44 = vmul.f32 %v2703_v11, %v73_v33  ;;  %v131_v61 = vmul.f32 %v2715_v30, %v73_v33 }
 0x22d   :  { %v2781_v7 = vadd.f32 %v635_v63, %v634_v57 }
 0x22e   :  { %v183_v43 = vadd.f32 %v2706_v13, %v129_v34  ;;  %v184_v35 = vadd.f32 %v2709_v20, %v130_v37  ;;  %v186_v59 = vadd.f32 %v2713_v26, %v132_v44  ;;  %v185_v6 = vadd.f32 %v2720_v47, %v131_v61 }
 0x22f   :  { %2366 = vtanh.f32 %v2781_v7 }
 0x239   :  { %v2367_v16 = vpop.eup %2366 }
 0x23a   :  { %v638_v31 = vmul.f32 %v2367_v16, %v632_v25 }
 0x23c   :  { %708 = vmatmul.mubr.f32.vlgmr.msra.gmra.mrb[4].mxu0 %v638_v31  ;;  %779 = vmatmul.mubr.f32.vlgmr.msra.gmra.mrb[4].mxu1 %v638_v31 }
 0x23d   :  { %1995 = vmatpush1.bf16.msra.mxu0 %v2551_v10  ;;  %2027 = vmatpush1.bf16.msra.mxu1 %v2554_v14 }
 0x23e   :  { %1997 = vmatprep.subr.bf16.mxu0 %v2558_v18  ;;  %2029 = vmatprep.subr.bf16.mxu1 %v2560_v19 }
 0x23f   :  { %875 = vmatprep.mubr.f32.mxu0 %v2482_v0  ;;  %946 = vmatprep.mubr.f32.mxu1 %v2482_v0 }
 0x241   :  { %1999 = vmatpush1.bf16.msra.mxu0 %v2563_v23  ;;  %2031 = vmatpush1.bf16.msra.mxu1 %v2567_v27 }
 0x242   :  { %2001 = vmatprep.subr.bf16.mxu0 %v2569_v28  ;;  %2033 = vmatprep.subr.bf16.mxu1 %v2571_v32 }
 0x245   :  { %2003 = vmatpush1.bf16.msra.mxu0 %v2574_v36  ;;  %2035 = vmatpush1.bf16.msra.mxu1 %v2578_v40 }
 0x246   :  { %2005 = vmatprep.subr.bf16.mxu0 %v2580_v41  ;;  %2037 = vmatprep.subr.bf16.mxu1 %v2583_v45 }
 0x249   :  { %2007 = vmatpush1.bf16.msra.mxu0 %v2586_v52  ;;  %2039 = vmatpush1.bf16.msra.mxu1 %v2590_v53 }
 0x24a   :  { %2009 = vmatprep.subr.bf16.mxu0 %v2592_v54  ;;  %2041 = vmatprep.subr.bf16.mxu1 %v2595_v58 }
 0x24d   :  { %2011 = vmatpush1.bf16.msra.mxu0 %v2598_v1  ;;  %2043 = vmatpush1.bf16.msra.mxu1 %v2602_v2 }
 0x24e   :  { %2013 = vmatprep.subr.bf16.mxu0 %v2604_v3  ;;  %2045 = vmatprep.subr.bf16.mxu1 %v2607_v8 }
 0x251   :  { %2015 = vmatpush1.bf16.msra.mxu0 %v2610_v17  ;;  %2047 = vmatpush1.bf16.msra.mxu1 %v2614_v21 }
 0x252   :  { %2017 = vmatprep.subr.bf16.mxu0 %v2616_v22  ;;  %2049 = vmatprep.subr.bf16.mxu1 %v2622_v29 }
 0x255   :  { %2019 = vmatpush1.bf16.msra.mxu0 %v2628_v38  ;;  %2051 = vmatpush1.bf16.msra.mxu1 %v2632_v39 }
 0x256   :  { %2021 = vmatprep.subr.bf16.mxu0 %v2634_v42  ;;  %2053 = vmatprep.subr.bf16.mxu1 %v2637_v46 }
 0x259   :  { %2023 = vmatpush1.bf16.msra.mxu0 %v2643_v50  ;;  %2055 = vmatpush1.bf16.msra.mxu1 %v2647_v51 }
 0x25a   :  { %2057 = vmatprep.subr.bf16.mxu0 %v2547_v5  ;;  %2089 = vmatprep.subr.bf16.mxu1 %v2549_v9 }
 0x30f   :  { %v709_v48 = vpop.f32.mrb[4].mxu0  ;;  %v780_v49 = vpop.f32.mrb[4].mxu1 }
 0x310   :  { %v785_v55 = vadd.f32 %v709_v48, %v183_v43  ;;  %v711_v56 = vpop.f32.mrb[5].mxu0  ;;  %v782_v60 = vpop.f32.mrb[5].mxu1  ;;  %v787_v15 = vadd.f32 %v780_v49, %v185_v6 }
 0x311   :  { %v786_v12 = vadd.f32 %v711_v56, %v184_v35  ;;  %v788_v57 = vadd.f32 %v782_v60, %v186_v59 }
 0x312   :  { %v789_v24 = vmul.f32 0.5, %v785_v55  ;;  %v791_v25 = vmul.f32 0.5, %v787_v15 }
 0x313   :  { %v790_v63 = vmul.f32 0.5, %v786_v12 }
 0x314   :  { %2368 = vtanh.f32 %v789_v24 }
 0x315   :  { %2370 = vtanh.f32 %v790_v63 }
 0x316   :  { %2372 = vtanh.f32 %v788_v57 }
 0x317   :  { %2374 = vtanh.f32 %v791_v25 }
 0x31e   :  { %v2369_v16 = vpop.eup %2368 }
 0x31f   :  { %v795_v31 = vmul.f32 0.5, %v2369_v16  ;;  %v2371_v34 = vpop.eup %2370 }
 0x320   :  { %v796_v43 = vmul.f32 0.5, %v2371_v34  ;;  %v2373_v44 = vpop.eup %2372 }
 0x321   :  { %v798_v37 = vadd.f32 0.5, %v795_v31  ;;  %v2375_v56 = vpop.eup %2374 }
 0x322   :  { %v799_v48 = vadd.f32 0.5, %v796_v43  ;;  %v797_v59 = vmul.f32 0.5, %v2375_v56 }
 0x323   :  { %v803_v33 = vmul.f32 %v2373_v44, %v798_v37 }
 0x324   :  { %v802_v35 = vmul.f32 %v799_v48, %v2781_v7  ;;  %v800_v60 = vadd.f32 0.5, %v797_v59  ;;  %v78_v7 = vpop.permute.xlu1 %77 }
 0x325   :  { %v133_v12 = vmul.f32 %v2696_v62, %v78_v7  ;;  %v134_v24 = vmul.f32 %v2698_v4, %v78_v7  ;;  %v136_v57 = vmul.f32 %v2703_v11, %v78_v7  ;;  %v135_v48 = vmul.f32 %v2715_v30, %v78_v7 }
 0x326   :  { %v2827_v55 = vadd.f32 %v803_v33, %v802_v35 }
 0x327   :  { %v187_v63 = vadd.f32 %v2706_v13, %v133_v12  ;;  %v188_v25 = vadd.f32 %v2709_v20, %v134_v24  ;;  %v190_v44 = vadd.f32 %v2713_v26, %v136_v57  ;;  %v189_v56 = vadd.f32 %v2720_v47, %v135_v48 }
 0x328   :  { %2376 = vtanh.f32 %v2827_v55 }
 0x332   :  { %v2377_v49 = vpop.eup %2376 }
 0x333   :  { %v806_v61 = vmul.f32 %v2377_v49, %v800_v60 }
 0x335   :  { %876 = vmatmul.mubr.f32.vlgmr.msra.gmra.mrb[6].mxu0 %v806_v61  ;;  %947 = vmatmul.mubr.f32.vlgmr.msra.gmra.mrb[6].mxu1 %v806_v61 }
 0x336   :  { %2059 = vmatpush1.bf16.msra.mxu0 %v2551_v10  ;;  %2091 = vmatpush1.bf16.msra.mxu1 %v2554_v14 }
 0x337   :  { %2061 = vmatprep.subr.bf16.mxu0 %v2558_v18  ;;  %2093 = vmatprep.subr.bf16.mxu1 %v2560_v19 }
 0x338   :  { %1043 = vmatprep.mubr.f32.mxu0 %v2482_v0  ;;  %1114 = vmatprep.mubr.f32.mxu1 %v2482_v0 }
 0x33a   :  { %2063 = vmatpush1.bf16.msra.mxu0 %v2563_v23  ;;  %2095 = vmatpush1.bf16.msra.mxu1 %v2567_v27 }
 0x33b   :  { %2065 = vmatprep.subr.bf16.mxu0 %v2569_v28  ;;  %2097 = vmatprep.subr.bf16.mxu1 %v2571_v32 }
 0x33e   :  { %2067 = vmatpush1.bf16.msra.mxu0 %v2574_v36  ;;  %2099 = vmatpush1.bf16.msra.mxu1 %v2578_v40 }
 0x33f   :  { %2069 = vmatprep.subr.bf16.mxu0 %v2580_v41  ;;  %2101 = vmatprep.subr.bf16.mxu1 %v2583_v45 }
 0x342   :  { %2071 = vmatpush1.bf16.msra.mxu0 %v2586_v52  ;;  %2103 = vmatpush1.bf16.msra.mxu1 %v2590_v53 }
 0x343   :  { %2073 = vmatprep.subr.bf16.mxu0 %v2592_v54  ;;  %2105 = vmatprep.subr.bf16.mxu1 %v2595_v58 }
 0x346   :  { %2075 = vmatpush1.bf16.msra.mxu0 %v2598_v1  ;;  %2107 = vmatpush1.bf16.msra.mxu1 %v2602_v2 }
 0x347   :  { %2077 = vmatprep.subr.bf16.mxu0 %v2604_v3  ;;  %2109 = vmatprep.subr.bf16.mxu1 %v2607_v8 }
 0x34a   :  { %2079 = vmatpush1.bf16.msra.mxu0 %v2610_v17  ;;  %2111 = vmatpush1.bf16.msra.mxu1 %v2614_v21 }
 0x34b   :  { %2081 = vmatprep.subr.bf16.mxu0 %v2616_v22  ;;  %2113 = vmatprep.subr.bf16.mxu1 %v2622_v29 }
 0x34e   :  { %2083 = vmatpush1.bf16.msra.mxu0 %v2628_v38  ;;  %2115 = vmatpush1.bf16.msra.mxu1 %v2632_v39 }
 0x34f   :  { %2085 = vmatprep.subr.bf16.mxu0 %v2634_v42  ;;  %2117 = vmatprep.subr.bf16.mxu1 %v2637_v46 }
 0x352   :  { %2087 = vmatpush1.bf16.msra.mxu0 %v2643_v50  ;;  %2119 = vmatpush1.bf16.msra.mxu1 %v2647_v51 }
 0x353   :  { %2121 = vmatprep.subr.bf16.mxu0 %v2547_v5  ;;  %2153 = vmatprep.subr.bf16.mxu1 %v2549_v9 }
 0x408   :  { %v877_v6 = vpop.f32.mrb[6].mxu0  ;;  %v948_v15 = vpop.f32.mrb[6].mxu1 }
 0x409   :  { %v953_v16 = vadd.f32 %v877_v6, %v187_v63  ;;  %v879_v31 = vpop.f32.mrb[7].mxu0  ;;  %v950_v34 = vpop.f32.mrb[7].mxu1  ;;  %v955_v59 = vadd.f32 %v948_v15, %v189_v56 }
 0x40a   :  { %v954_v37 = vadd.f32 %v879_v31, %v188_v25  ;;  %v956_v35 = vadd.f32 %v950_v34, %v190_v44 }
 0x40b   :  { %v957_v43 = vmul.f32 0.5, %v953_v16  ;;  %v959_v60 = vmul.f32 0.5, %v955_v59 }
 0x40c   :  { %v958_v33 = vmul.f32 0.5, %v954_v37 }
 0x40d   :  { %2378 = vtanh.f32 %v957_v43 }
 0x40e   :  { %2380 = vtanh.f32 %v958_v33 }
 0x40f   :  { %2382 = vtanh.f32 %v956_v35 }
 0x410   :  { %2384 = vtanh.f32 %v959_v60 }
 0x417   :  { %v2379_v49 = vpop.eup %2378 }
 0x418   :  { %v963_v61 = vmul.f32 0.5, %v2379_v49  ;;  %v2381_v12 = vpop.eup %2380 }
 0x419   :  { %v964_v63 = vmul.f32 0.5, %v2381_v12  ;;  %v2383_v6 = vpop.eup %2382 }
 0x41a   :  { %v966_v24 = vadd.f32 0.5, %v963_v61  ;;  %v2385_v31 = vpop.eup %2384 }
 0x41b   :  { %v967_v25 = vadd.f32 0.5, %v964_v63  ;;  %v965_v34 = vmul.f32 0.5, %v2385_v31 }
 0x41c   :  { %v971_v57 = vmul.f32 %v2383_v6, %v966_v24 }
 0x41d   :  { %v970_v7 = vmul.f32 %v967_v25, %v2827_v55  ;;  %v968_v37 = vadd.f32 0.5, %v965_v34  ;;  %v83_v55 = vpop.permute.xlu0 %82 }
 0x41e   :  { %v137_v44 = vmul.f32 %v2696_v62, %v83_v55  ;;  %v138_v48 = vmul.f32 %v2698_v4, %v83_v55  ;;  %v140_v35 = vmul.f32 %v2703_v11, %v83_v55  ;;  %v139_v25 = vmul.f32 %v2715_v30, %v83_v55 }
 0x41f   :  { %v2873_v16 = vadd.f32 %v971_v57, %v970_v7 }
 0x420   :  { %v191_v33 = vadd.f32 %v2706_v13, %v137_v44  ;;  %v192_v60 = vadd.f32 %v2709_v20, %v138_v48  ;;  %v194_v6 = vadd.f32 %v2713_v26, %v140_v35  ;;  %v193_v31 = vadd.f32 %v2720_v47, %v139_v25 }
 0x421   :  { %2386 = vtanh.f32 %v2873_v16 }
 0x42b   :  { %v2387_v15 = vpop.eup %2386 }
 0x42c   :  { %v974_v43 = vmul.f32 %v2387_v15, %v968_v37 }
 0x42e   :  { %1044 = vmatmul.mubr.f32.vlgmr.msra.gmra.mrb[8].mxu0 %v974_v43  ;;  %1115 = vmatmul.mubr.f32.vlgmr.msra.gmra.mrb[8].mxu1 %v974_v43 }
 0x42f   :  { %2123 = vmatpush1.bf16.msra.mxu0 %v2551_v10  ;;  %2155 = vmatpush1.bf16.msra.mxu1 %v2554_v14 }
 0x430   :  { %2125 = vmatprep.subr.bf16.mxu0 %v2558_v18  ;;  %2157 = vmatprep.subr.bf16.mxu1 %v2560_v19 }
 0x431   :  { %1211 = vmatprep.mubr.f32.mxu0 %v2482_v0  ;;  %1282 = vmatprep.mubr.f32.mxu1 %v2482_v0 }
 0x433   :  { %2127 = vmatpush1.bf16.msra.mxu0 %v2563_v23  ;;  %2159 = vmatpush1.bf16.msra.mxu1 %v2567_v27 }
 0x434   :  { %2129 = vmatprep.subr.bf16.mxu0 %v2569_v28  ;;  %2161 = vmatprep.subr.bf16.mxu1 %v2571_v32 }
 0x437   :  { %2131 = vmatpush1.bf16.msra.mxu0 %v2574_v36  ;;  %2163 = vmatpush1.bf16.msra.mxu1 %v2578_v40 }
 0x438   :  { %2133 = vmatprep.subr.bf16.mxu0 %v2580_v41  ;;  %2165 = vmatprep.subr.bf16.mxu1 %v2583_v45 }
 0x43b   :  { %2135 = vmatpush1.bf16.msra.mxu0 %v2586_v52  ;;  %2167 = vmatpush1.bf16.msra.mxu1 %v2590_v53 }
 0x43c   :  { %2137 = vmatprep.subr.bf16.mxu0 %v2592_v54  ;;  %2169 = vmatprep.subr.bf16.mxu1 %v2595_v58 }
 0x43f   :  { %2139 = vmatpush1.bf16.msra.mxu0 %v2598_v1  ;;  %2171 = vmatpush1.bf16.msra.mxu1 %v2602_v2 }
 0x440   :  { %2141 = vmatprep.subr.bf16.mxu0 %v2604_v3  ;;  %2173 = vmatprep.subr.bf16.mxu1 %v2607_v8 }
 0x443   :  { %2143 = vmatpush1.bf16.msra.mxu0 %v2610_v17  ;;  %2175 = vmatpush1.bf16.msra.mxu1 %v2614_v21 }
 0x444   :  { %2145 = vmatprep.subr.bf16.mxu0 %v2616_v22  ;;  %2177 = vmatprep.subr.bf16.mxu1 %v2622_v29 }
 0x447   :  { %2147 = vmatpush1.bf16.msra.mxu0 %v2628_v38  ;;  %2179 = vmatpush1.bf16.msra.mxu1 %v2632_v39 }
 0x448   :  { %2149 = vmatprep.subr.bf16.mxu0 %v2634_v42  ;;  %2181 = vmatprep.subr.bf16.mxu1 %v2637_v46 }
 0x44b   :  { %2151 = vmatpush1.bf16.msra.mxu0 %v2643_v50  ;;  %2183 = vmatpush1.bf16.msra.mxu1 %v2647_v51 }
 0x44c   :  { %2185 = vmatprep.subr.bf16.mxu0 %v2547_v5  ;;  %2217 = vmatprep.subr.bf16.mxu1 %v2549_v9 }
 0x501   :  { %v1045_v56 = vpop.f32.mrb[8].mxu0  ;;  %v1116_v59 = vpop.f32.mrb[8].mxu1 }
 0x502   :  { %v1121_v49 = vadd.f32 %v1045_v56, %v191_v33  ;;  %v1047_v61 = vpop.f32.mrb[9].mxu0  ;;  %v1118_v12 = vpop.f32.mrb[9].mxu1  ;;  %v1123_v34 = vadd.f32 %v1116_v59, %v193_v31 }
 0x503   :  { %v1122_v24 = vadd.f32 %v1047_v61, %v192_v60  ;;  %v1124_v7 = vadd.f32 %v1118_v12, %v194_v6 }
 0x504   :  { %v1125_v63 = vmul.f32 0.5, %v1121_v49  ;;  %v1127_v37 = vmul.f32 0.5, %v1123_v34 }
 0x505   :  { %v1126_v57 = vmul.f32 0.5, %v1122_v24 }
 0x506   :  { %2388 = vtanh.f32 %v1125_v63 }
 0x507   :  { %2390 = vtanh.f32 %v1126_v57 }
 0x508   :  { %2392 = vtanh.f32 %v1124_v7 }
 0x509   :  { %2394 = vtanh.f32 %v1127_v37 }
 0x510   :  { %v2389_v15 = vpop.eup %2388 }
 0x511   :  { %v1131_v43 = vmul.f32 0.5, %v2389_v15  ;;  %v2391_v44 = vpop.eup %2390 }
 0x512   :  { %v1132_v33 = vmul.f32 0.5, %v2391_v44  ;;  %v2393_v56 = vpop.eup %2392 }
 0x513   :  { %v1134_v48 = vadd.f32 0.5, %v1131_v43  ;;  %v2395_v61 = vpop.eup %2394 }
 0x514   :  { %v1135_v60 = vadd.f32 0.5, %v1132_v33  ;;  %v1133_v12 = vmul.f32 0.5, %v2395_v61 }
 0x515   :  { %v1139_v35 = vmul.f32 %v2393_v56, %v1134_v48 }
 0x516   :  { %v1138_v55 = vmul.f32 %v1135_v60, %v2873_v16  ;;  %v1136_v24 = vadd.f32 0.5, %v1133_v12  ;;  %v88_v16 = vpop.permute.xlu1 %87 }
 0x517   :  { %v141_v6 = vmul.f32 %v2696_v62, %v88_v16  ;;  %v142_v25 = vmul.f32 %v2698_v4, %v88_v16  ;;  %v144_v7 = vmul.f32 %v2703_v11, %v88_v16  ;;  %v143_v33 = vmul.f32 %v2715_v30, %v88_v16 }
 0x518   :  { %v2919_v49 = vadd.f32 %v1139_v35, %v1138_v55 }
 0x519   :  { %v195_v57 = vadd.f32 %v2706_v13, %v141_v6  ;;  %v196_v37 = vadd.f32 %v2709_v20, %v142_v25  ;;  %v197_v35 = vadd.f32 %v2720_v47, %v143_v33 }
 0x51a   :  { %2396 = vtanh.f32 %v2919_v49 }
 0x524   :  { %v2397_v59 = vpop.eup %2396 }
 0x525   :  { %v1142_v63 = vmul.f32 %v2397_v59, %v1136_v24 }
 0x527   :  { %1212 = vmatmul.mubr.f32.vlgmr.msra.gmra.mrb[10].mxu0 %v1142_v63  ;;  %1283 = vmatmul.mubr.f32.vlgmr.msra.gmra.mrb[10].mxu1 %v1142_v63 }
 0x528   :  { %2187 = vmatpush1.bf16.msra.mxu0 %v2551_v10  ;;  %2219 = vmatpush1.bf16.msra.mxu1 %v2554_v14 }
 0x529   :  { %2189 = vmatprep.subr.bf16.mxu0 %v2558_v18  ;;  %2221 = vmatprep.subr.bf16.mxu1 %v2560_v19 }
 0x52a   :  { %1379 = vmatprep.mubr.f32.mxu0 %v2482_v0  ;;  %1450 = vmatprep.mubr.f32.mxu1 %v2482_v0 }
 0x52c   :  { %2191 = vmatpush1.bf16.msra.mxu0 %v2563_v23  ;;  %2223 = vmatpush1.bf16.msra.mxu1 %v2567_v27 }
 0x52d   :  { %2193 = vmatprep.subr.bf16.mxu0 %v2569_v28  ;;  %2225 = vmatprep.subr.bf16.mxu1 %v2571_v32 }
 0x530   :  { %2195 = vmatpush1.bf16.msra.mxu0 %v2574_v36  ;;  %2227 = vmatpush1.bf16.msra.mxu1 %v2578_v40 }
 0x531   :  { %2197 = vmatprep.subr.bf16.mxu0 %v2580_v41  ;;  %2229 = vmatprep.subr.bf16.mxu1 %v2583_v45 }
 0x534   :  { %2199 = vmatpush1.bf16.msra.mxu0 %v2586_v52  ;;  %2231 = vmatpush1.bf16.msra.mxu1 %v2590_v53 }
 0x535   :  { %2201 = vmatprep.subr.bf16.mxu0 %v2592_v54  ;;  %2233 = vmatprep.subr.bf16.mxu1 %v2595_v58 }
 0x538   :  { %2203 = vmatpush1.bf16.msra.mxu0 %v2598_v1  ;;  %2235 = vmatpush1.bf16.msra.mxu1 %v2602_v2 }
 0x539   :  { %2205 = vmatprep.subr.bf16.mxu0 %v2604_v3  ;;  %2237 = vmatprep.subr.bf16.mxu1 %v2607_v8 }
 0x53c   :  { %2207 = vmatpush1.bf16.msra.mxu0 %v2610_v17  ;;  %2239 = vmatpush1.bf16.msra.mxu1 %v2614_v21 }
 0x53d   :  { %2209 = vmatprep.subr.bf16.mxu0 %v2616_v22  ;;  %2241 = vmatprep.subr.bf16.mxu1 %v2622_v29 }
 0x540   :  { %2211 = vmatpush1.bf16.msra.mxu0 %v2628_v38  ;;  %2243 = vmatpush1.bf16.msra.mxu1 %v2632_v39 }
 0x541   :  { %2213 = vmatprep.subr.bf16.mxu0 %v2634_v42  ;;  %2245 = vmatprep.subr.bf16.mxu1 %v2637_v46 }
 0x544   :  { %2215 = vmatpush1.bf16.msra.mxu0 %v2643_v50  ;;  %2247 = vmatpush1.bf16.msra.mxu1 %v2647_v51 }
 0x545   :  { %2249 = vmatprep.subr.bf16.mxu0 %v2547_v5  ;;  %2281 = vmatprep.subr.bf16.mxu1 %v2549_v9  ;;  %v198_v9 = vadd.f32 %v2713_v26, %v144_v7 }
 0x5fa   :  { %v1213_v31 = vpop.f32.mrb[10].mxu0  ;;  %v1284_v34 = vpop.f32.mrb[10].mxu1 }
 0x5fb   :  { %v1289_v15 = vadd.f32 %v1213_v31, %v195_v57  ;;  %v1215_v43 = vpop.f32.mrb[11].mxu0  ;;  %v1286_v44 = vpop.f32.mrb[11].mxu1  ;;  %v1291_v55 = vadd.f32 %v1284_v34, %v197_v35 }
 0x5fc   :  { %v1290_v48 = vadd.f32 %v1215_v43, %v196_v37  ;;  %v1292_v60 = vadd.f32 %v1286_v44, %v198_v9 }
 0x5fd   :  { %v1293_v5 = vmul.f32 0.5, %v1289_v15  ;;  %v1295_v61 = vmul.f32 0.5, %v1291_v55  ;;  %v2484_v55 = vmov 0.0|0.0  }
 0x5fe   :  { %v1294_v56 = vmul.f32 0.5, %v1290_v48 }
 0x5ff   :  { %2398 = vtanh.f32 %v1293_v5 }
 0x600   :  { %2400 = vtanh.f32 %v1294_v56  ;;  %v1647_v56 = vld [vmem:[#allocation5] sm:$0xff] }
 0x601   :  { %2402 = vtanh.f32 %v1292_v60  ;;  %v1648_v60 = vld [vmem:[#allocation5 + $0x8] sm:$0xff] }
 0x602   :  { %2404 = vtanh.f32 %v1295_v61  ;;  %v2313_v35 = vpack.c.bf16 %v1648_v60, %v1647_v56  ;;  %v1649_v61 = vld [vmem:[#allocation5 + $0x10] sm:$0xff] }
 0x609   :  { %v2399_v12 = vpop.eup %2398 }
 0x60a   :  { %v1299_v24 = vmul.f32 0.5, %v2399_v12  ;;  %v2401_v59 = vpop.eup %2400  ;;  %v1650_v12 = vld [vmem:[#allocation5 + $0x18] sm:$0xff] }
 0x60b   :  { %v1300_v6 = vmul.f32 0.5, %v2401_v59  ;;  %v2403_v25 = vpop.eup %2402  ;;  %v1651_v59 = vld [vmem:[#allocation5 + $0x20] sm:$0xff] }
 0x60c   :  { %v1302_v63 = vadd.f32 0.5, %v1299_v24  ;;  %v2405_v37 = vpop.eup %2404  ;;  %v2316_v24 = vpack.c.bf16 %v1650_v12, %v1649_v61 }
 0x60d   :  { %v1303_v57 = vadd.f32 0.5, %v1300_v6  ;;  %v1301_v15 = vmul.f32 0.5, %v2405_v37 }
 0x60e   :  { %v1307_v7 = vmul.f32 %v2403_v25, %v1302_v63  ;;  %v1652_v63 = vld [vmem:[#allocation5 + $0x28] sm:$0xff]  ;;  %v1653_v25 = vld [vmem:[#allocation5 + $0x30] sm:$0xff] }
 0x60f   :  { %v1306_v16 = vmul.f32 %v1303_v57, %v2919_v49  ;;  %v1304_v43 = vadd.f32 0.5, %v1301_v15  ;;  %v2319_v6 = vpack.c.bf16 %v1652_v63, %v1651_v59  ;;  %v1654_v57 = vld [vmem:[#allocation5 + $0x38] sm:$0xff]  ;;  %v1657_v15 = vld [vmem:[#allocation5 + $0x50] sm:$0xff] }
 0x611   :  { %v2965_v31 = vadd.f32 %v1307_v7, %v1306_v16  ;;  %v2322_v7 = vpack.c.bf16 %v1654_v57, %v1653_v25  ;;  %v1655_v16 = vld [vmem:[#allocation5 + $0x40] sm:$0xff] }
 0x613   :  { %2406 = vtanh.f32 %v2965_v31 }
 0x61d   :  { %v2407_v34 = vpop.eup %2406 }
 0x61e   :  { %v1310_v44 = vmul.f32 %v2407_v34, %v1304_v43  ;;  %v1658_v43 = vld [vmem:[#allocation5 + $0x58] sm:$0xff] }
 0x61f   :  { %v2328_v34 = vpack.c.bf16 %v1658_v43, %v1657_v15 }
 0x620   :  { %1380 = vmatmul.mubr.f32.vlgmr.msra.gmra.mrb[12].mxu0 %v1310_v44  ;;  %1451 = vmatmul.mubr.f32.vlgmr.msra.gmra.mrb[12].mxu1 %v1310_v44  ;;  %v1659_v44 = vld [vmem:[#allocation5 + $0x60] sm:$0xff] }
 0x621   :  { %2251 = vmatpush1.bf16.msra.mxu0 %v2551_v10  ;;  %2283 = vmatpush1.bf16.msra.mxu1 %v2554_v14  ;;  %v93_v10 = vpop.permute.xlu0 %92 }
 0x622   :  { %2253 = vmatprep.subr.bf16.mxu0 %v2558_v18  ;;  %2285 = vmatprep.subr.bf16.mxu1 %v2560_v19  ;;  %v145_v14 = vmul.f32 %v2696_v62, %v93_v10  ;;  %v146_v18 = vmul.f32 %v2698_v4, %v93_v10  ;;  %v148_v19 = vmul.f32 %v2703_v11, %v93_v10 }
 0x623   :  { %1547 = vmatprep.mubr.f32.mxu0 %v2482_v0  ;;  %1618 = vmatprep.mubr.f32.mxu1 %v2482_v0 }
 0x625   :  { %2255 = vmatpush1.bf16.msra.mxu0 %v2563_v23  ;;  %2287 = vmatpush1.bf16.msra.mxu1 %v2567_v27  ;;  %v199_v23 = vadd.f32 %v2706_v13, %v145_v14 }
 0x626   :  { %2257 = vmatprep.subr.bf16.mxu0 %v2569_v28  ;;  %2289 = vmatprep.subr.bf16.mxu1 %v2571_v32  ;;  %v200_v32 = vadd.f32 %v2709_v20, %v146_v18  ;;  %v1661_v18 = vld [vmem:[#allocation5 + $0x70] sm:$0xff] }
 0x629   :  { %2259 = vmatpush1.bf16.msra.mxu0 %v2574_v36  ;;  %2291 = vmatpush1.bf16.msra.mxu1 %v2578_v40 }
 0x62a   :  { %2261 = vmatprep.subr.bf16.mxu0 %v2580_v41  ;;  %2293 = vmatprep.subr.bf16.mxu1 %v2583_v45 }
 0x62d   :  { %2263 = vmatpush1.bf16.msra.mxu0 %v2586_v52  ;;  %2295 = vmatpush1.bf16.msra.mxu1 %v2590_v53  ;;  %v202_v53 = vadd.f32 %v2713_v26, %v148_v19  ;;  %v1662_v19 = vld [vmem:[#allocation5 + $0x78] sm:$0xff] }
 0x62e   :  { %2265 = vmatprep.subr.bf16.mxu0 %v2592_v54  ;;  %2297 = vmatprep.subr.bf16.mxu1 %v2595_v58  ;;  %v147_v54 = vmul.f32 %v2715_v30, %v93_v10  ;;  %v1660_v10 = vld [vmem:[#allocation5 + $0x68] sm:$0xff] }
 0x62f   :  { %v2331_v14 = vpack.c.bf16 %v1660_v10, %v1659_v44 }
 0x631   :  { %2267 = vmatpush1.bf16.msra.mxu0 %v2598_v1  ;;  %2299 = vmatpush1.bf16.msra.mxu1 %v2602_v2  ;;  %v201_v2 = vadd.f32 %v2720_v47, %v147_v54 }
 0x632   :  { %2269 = vmatprep.subr.bf16.mxu0 %v2604_v3  ;;  %2301 = vmatprep.subr.bf16.mxu1 %v2607_v8 }
 0x635   :  { %2271 = vmatpush1.bf16.msra.mxu0 %v2610_v17  ;;  %2303 = vmatpush1.bf16.msra.mxu1 %v2614_v21 }
 0x636   :  { %2273 = vmatprep.subr.bf16.mxu0 %v2616_v22  ;;  %2305 = vmatprep.subr.bf16.mxu1 %v2622_v29 }
 0x639   :  { %2275 = vmatpush1.bf16.msra.mxu0 %v2628_v38  ;;  %2307 = vmatpush1.bf16.msra.mxu1 %v2632_v39 }
 0x63a   :  { %2277 = vmatprep.subr.bf16.mxu0 %v2634_v42  ;;  %2309 = vmatprep.subr.bf16.mxu1 %v2637_v46 }
 0x63d   :  { %2279 = vmatpush1.bf16.msra.mxu0 %v2643_v50  ;;  %2311 = vmatpush1.bf16.msra.mxu1 %v2647_v51 }
 0x63e   :  { %2312 = vmatprep.subr.bf16.mxu0 %v2484_v55 }
 0x6f3   :  { %v1381_v27 = vpop.f32.mrb[12].mxu0  ;;  %v1452_v28 = vpop.f32.mrb[12].mxu1 }
 0x6f4   :  { %v1457_v36 = vadd.f32 %v1381_v27, %v199_v23  ;;  %v1383_v40 = vpop.f32.mrb[13].mxu0  ;;  %v1454_v41 = vpop.f32.mrb[13].mxu1  ;;  %v1459_v3 = vadd.f32 %v1452_v28, %v201_v2  ;;  %v2334_v23 = vpack.c.bf16 %v1662_v19, %v1661_v18 }
 0x6f5   :  { %v1458_v45 = vadd.f32 %v1383_v40, %v200_v32  ;;  %v1460_v1 = vadd.f32 %v1454_v41, %v202_v53  ;;  %v98_v27 = vpop.permute.xlu1 %97 }
 0x6f6   :  { %v1461_v52 = vmul.f32 0.5, %v1457_v36  ;;  %v1463_v8 = vmul.f32 0.5, %v1459_v3  ;;  %v149_v28 = vmul.f32 %v2696_v62, %v98_v27  ;;  %v150_v32 = vmul.f32 %v2698_v4, %v98_v27 }
 0x6f7   :  { %v1462_v58 = vmul.f32 0.5, %v1458_v45  ;;  %v152_v36 = vmul.f32 %v2703_v11, %v98_v27  ;;  %v151_v3 = vmul.f32 %v2715_v30, %v98_v27 }
 0x6f8   :  { %2408 = vtanh.f32 %v1461_v52  ;;  %v203_v40 = vadd.f32 %v2706_v13, %v149_v28  ;;  %v204_v45 = vadd.f32 %v2709_v20, %v150_v32 }
 0x6f9   :  { %2410 = vtanh.f32 %v1462_v58  ;;  %v206_v2 = vadd.f32 %v2713_v26, %v152_v36  ;;  %v205_v11 = vadd.f32 %v2720_v47, %v151_v3 }
 0x6fa   :  { %2412 = vtanh.f32 %v1460_v1 }
 0x6fb   :  { %2414 = vtanh.f32 %v1463_v8 }
 0x702   :  { %v2409_v17 = vpop.eup %2408 }
 0x703   :  { %v1467_v21 = vmul.f32 0.5, %v2409_v17  ;;  %v2411_v22 = vpop.eup %2410 }
 0x704   :  { %v1468_v38 = vmul.f32 0.5, %v2411_v22  ;;  %v2413_v39 = vpop.eup %2412 }
 0x705   :  { %v1470_v29 = vadd.f32 0.5, %v1467_v21  ;;  %v2415_v49 = vpop.eup %2414 }
 0x706   :  { %v1471_v42 = vadd.f32 0.5, %v1468_v38  ;;  %v1469_v48 = vmul.f32 0.5, %v2415_v49 }
 0x707   :  { %v1475_v46 = vmul.f32 %v2413_v39, %v1470_v29 }
 0x708   :  { %v1474_v50 = vmul.f32 %v1471_v42, %v2965_v31  ;;  %v1472_v5 = vadd.f32 0.5, %v1469_v48  ;;  %v1656_v31 = vld [vmem:[#allocation5 + $0x48] sm:$0xff] }
 0x709   :  { %v2325_v37 = vpack.c.bf16 %v1656_v31, %v1655_v16 }
 0x70a   :  { %v3009_v51 = vadd.f32 %v1475_v46, %v1474_v50 }
 0x70c   :  { %2416 = vtanh.f32 %v3009_v51 }
 0x716   :  { %v2417_v9 = vpop.eup %2416 }
 0x717   :  { %v1478_v33 = vmul.f32 %v2417_v9, %v1472_v5  ;;  %v1747_v5 = vld [vmem:[%s3033_s5] ss:$0 sm:$0xff] }
 0x719   :  { %1548 = vmatmul.mubr.f32.vlgmr.msra.gmra.mrb[14].mxu0 %v1478_v33  ;;  %1619 = vmatmul.mubr.f32.vlgmr.msra.gmra.mrb[14].mxu1 %v1478_v33 }
 0x71a   :  { %2314 = vmatpush3.bf16.msra.mxu0 %v2313_v35  ;;  %1797 = vmatprep.mubr.msk.f32.mxu0 %vm2485_vm0, %v2482_v0 }
 0x71b   :  { %2315 = vmatprep.subr.bf16.mxu0 %v2484_v55 }
 0x71e   :  { %2317 = vmatpush3.bf16.msra.mxu0 %v2316_v24 }
 0x71f   :  { %2318 = vmatprep.subr.bf16.mxu0 %v2484_v55 }
 0x722   :  { %2320 = vmatpush3.bf16.msra.mxu0 %v2319_v6 }
 0x723   :  { %2321 = vmatprep.subr.bf16.mxu0 %v2484_v55 }
 0x726   :  { %2323 = vmatpush3.bf16.msra.mxu0 %v2322_v7 }
 0x727   :  { %2324 = vmatprep.subr.bf16.mxu0 %v2484_v55 }
 0x72a   :  { %2326 = vmatpush3.bf16.msra.mxu0 %v2325_v37 }
 0x72b   :  { %2327 = vmatprep.subr.bf16.mxu0 %v2484_v55 }
 0x72e   :  { %2329 = vmatpush3.bf16.msra.mxu0 %v2328_v34 }
 0x72f   :  { %2330 = vmatprep.subr.bf16.mxu0 %v2484_v55 }
 0x732   :  { %2332 = vmatpush3.bf16.msra.mxu0 %v2331_v14 }
 0x733   :  { %2333 = vmatprep.subr.bf16.mxu0 %v2484_v55 }
 0x736   :  { %2335 = vmatpush3.bf16.msra.mxu0 %v2334_v23 }
 0x7ec   :  { %v1549_v41 = vpop.f32.mrb[14].mxu0  ;;  %v1620_v0 = vpop.f32.mrb[14].mxu1 }
 0x7ed   :  { %v1625_v52 = vadd.f32 %v1549_v41, %v203_v40  ;;  %v1551_v53 = vpop.f32.mrb[15].mxu0  ;;  %v1622_v54 = vpop.f32.mrb[15].mxu1  ;;  %v1627_v13 = vadd.f32 %v1620_v0, %v205_v11 }
 0x7ee   :  { %v1626_v58 = vadd.f32 %v1551_v53, %v204_v45  ;;  %v1628_v4 = vadd.f32 %v1622_v54, %v206_v2 }
 0x7ef   :  { %v1629_v1 = vmul.f32 0.5, %v1625_v52  ;;  %v1631_v8 = vmul.f32 0.5, %v1627_v13 }
 0x7f0   :  { %v1630_v62 = vmul.f32 0.5, %v1626_v58 }
 0x7f1   :  { %2418 = vtanh.f32 %v1629_v1 }
 0x7f2   :  { %2420 = vtanh.f32 %v1630_v62 }
 0x7f3   :  { %2422 = vtanh.f32 %v1628_v4 }
 0x7f4   :  { %2424 = vtanh.f32 %v1631_v8 }
 0x7fb   :  { %v2419_v17 = vpop.eup %2418 }
 0x7fc   :  { %v1635_v20 = vmul.f32 0.5, %v2419_v17  ;;  %v2421_v21 = vpop.eup %2420 }
 0x7fd   :  { %v1636_v29 = vmul.f32 0.5, %v2421_v21  ;;  %v2423_v38 = vpop.eup %2422 }
 0x7fe   :  { %v1638_v22 = vadd.f32 0.5, %v1635_v20  ;;  %v2425_v46 = vpop.eup %2424 }
 0x7ff   :  { %v1639_v39 = vadd.f32 0.5, %v1636_v29  ;;  %v1637_v50 = vmul.f32 0.5, %v2425_v46 }
 0x800   :  { %v1643_v26 = vmul.f32 %v2423_v38, %v1638_v22 }
 0x801   :  { %v1642_v30 = vmul.f32 %v1639_v39, %v3009_v51  ;;  %v1640_v49 = vadd.f32 0.5, %v1637_v50 }
 0x803   :  { %v1644_v42 = vadd.f32 %v1643_v26, %v1642_v30 }
 0x805   :  { %2426 = vtanh.f32 %v1644_v42 }
 0x80f   :  { %v2427_v47 = vpop.eup %2426 }
 0x810   :  { %v1646_v48 = vmul.f32 %v2427_v47, %v1640_v49 }
 0x812   :  { %1798 = vmatmul.mubr.f32.vlgmr.msra.gmra.mrb[16].mxu0 %v1646_v48 }
 0x8e5   :  { %v1736_v9 = vpop.f32.mrb[16].mxu0 }
 0x8e6   :  { %v1737_v33 = vadd.f32 %v1747_v5, %v1736_v9  ;;  %v1799_v56 = vpop.f32.mrb[17].mxu0 }
 0x8e8   :  { %1740 = vst [vmem:[%s3034_s6] sm:$0xff] %v1737_v33 }
 0x8e9   :  { %1745 = vsyncpa [#allocation4], 1 }
 0x8ea   :  { %1746 = vsyncpa [#allocation6], 1 }

</bundles_post_ra>
